<compile_context>
chip_gen: v6e
topology: v6e:2x2x1
jax: 0.10.0
libtpu: 0.0.40
codegen_flags: <defaults>
</compile_context>

<pallas_src>
import functools

import jax
import jax.numpy as jnp
from jax import lax
from jax.experimental import pallas as pl
from jax.experimental.pallas import tpu as pltpu


# ------------------------------ fused kernel ------------------------------- #

def make_fused_kernel(L, B, H, num_layers):
    """Fused forward kernel for static (L, B, H, num_layers).  B is sublane-padded.

    Combined gate layout (per step, per batch row), width G = 8H:
        [ i_fwd | i_bwd | f_fwd | f_bwd | g_fwd | g_bwd | o_fwd | o_bwd ]
    so each gate's 2H-wide slice lines up with the carry layout h = [h_fwd | h_bwd],
    where at step t:  h_fwd is for position t, h_bwd is for position L-1-t.
    """
    G = 8 * H

    def kernel(*refs):
        idx = 0
        xz_ref = refs[idx]; idx += 1                     # (L*B, 2*T) paired layer-0 input
        layer_refs = []
        for _ in range(num_layers):
            layer_refs.append(refs[idx:idx + 3]); idx += 3   # (R, b, whh) per layer
        fcw_ref = refs[idx]; idx += 1                    # (L, 2H) permuted fc weights
        fcb_ref = refs[idx]; idx += 1                    # (1, 1)
        logits_ref = refs[idx]                           # (B, 1) output

        # Static lane mask selecting the tanh-activated "g" gate stripe [4H, 6H).
        lane = lax.broadcasted_iota(jnp.int32, (B, G), 1)
        g_mask = (lane >= 4 * H) & (lane < 6 * H)

        h_steps = []                                     # per-step [h_fwd | h_bwd]
        for l in range(num_layers):
            r_ref, b_ref, whh_ref = layer_refs[l]

            # --- hoisted, merged input-to-gate projection (one dot per layer) ---
            if l == 0:
                z = xz_ref[...]                          # rows: (position, batch)
            else:
                # Z_t = [h_step[t] | h_step[L-1-t]]  ->  (L*B, 4H = 128 lanes).
                # Weight permutation in pack_params makes Z @ R produce the combined
                # per-step pre-gates directly (fwd gates for pos t, bwd for L-1-t).
                z = jnp.concatenate(
                    [jnp.concatenate([h_steps[t], h_steps[L - 1 - t]], axis=1)
                     for t in range(L)], axis=0)
            gx = jnp.dot(z, r_ref[...], preferred_element_type=jnp.float32) + b_ref[...]
            gx_blocks = [gx[t * B:(t + 1) * B, :] for t in range(L)]   # aligned slices

            whh = whh_ref[...]                           # (2H, G) bf16, loaded once

            h = jnp.zeros((B, 2 * H), jnp.float32)
            c = jnp.zeros((B, 2 * H), jnp.float32)
            h_steps = []
            for t in range(L):                           # fully unrolled, static indices
                if t == 0:
                    gates = gx_blocks[0]                 # h0 == 0: skip recurrent dot
                else:
                    gates = gx_blocks[t] + jnp.dot(
                        h.astype(jnp.bfloat16), whh,
                        preferred_element_type=jnp.float32)          # (B, G)

                # One EUP pass: tanh(x) = 2*sigmoid(2x) - 1 on the g-stripe only.
                pre = jnp.where(g_mask, 2.0 * gates, gates)
                s = jax.nn.sigmoid(pre)
                act = jnp.where(g_mask, 2.0 * s - 1.0, s)

                i_g = act[:, 0:2 * H]
                f_g = act[:, 2 * H:4 * H]
                g_g = act[:, 4 * H:6 * H]
                o_g = act[:, 6 * H:8 * H]

                c = f_g * c + i_g * g_g
                h = o_g * jnp.tanh(c)
                h_steps.append(h)

        # Fused fc (Flatten + Linear), off the recurrence critical path.
        fcw = fcw_ref[...]                               # (L, 2H), loaded once
        acc = jnp.zeros((B, 2 * H), jnp.float32)
        for t in range(L):
            acc = acc + h_steps[t] * fcw[t:t + 1, :]
        logits_ref[...] = (jnp.sum(acc, axis=1, keepdims=True)
                           + fcb_ref[...]).astype(logits_ref.dtype)

    return kernel


# ------------------------- parameter init & packing ------------------------ #

def init_params(key, length, token_size, embed_size, hidden_size, num_layers):
    """PyTorch-style uniform init, kept in raw (PyTorch-shaped) form."""
    H = hidden_size
    raw = {}
    key, k1, k2 = jax.random.split(key, 3)
    bound = 1.0 / jnp.sqrt(token_size)
    raw["proj_w_t"] = jax.random.uniform(k1, (token_size, embed_size), jnp.float32, -bound, bound)
    raw["proj_b"] = jax.random.uniform(k2, (embed_size,), jnp.float32, -bound, bound)

    raw["lstm"] = []
    bound = 1.0 / jnp.sqrt(H)
    for layer in range(num_layers):
        in_size = embed_size if layer == 0 else 2 * H
        dirs = []
        for _d in range(2):
            key, ka, kb, kc, kd = jax.random.split(key, 5)
            dirs.append({
                "w_ih": jax.random.uniform(ka, (4 * H, in_size), jnp.float32, -bound, bound),
                "w_hh": jax.random.uniform(kb, (4 * H, H), jnp.float32, -bound, bound),
                "b_ih": jax.random.uniform(kc, (4 * H,), jnp.float32, -bound, bound),
                "b_hh": jax.random.uniform(kd, (4 * H,), jnp.float32, -bound, bound),
            })
        raw["lstm"].append(dirs)

    fc_in = length * hidden_size * 2
    bound = 1.0 / jnp.sqrt(fc_in)
    key, k1, k2 = jax.random.split(key, 3)
    raw["fc_w_t"] = jax.random.uniform(k1, (fc_in, 1), jnp.float32, -bound, bound)
    raw["fc_b"] = jax.random.uniform(k2, (1, 1), jnp.float32, -bound, bound)
    return raw


def pack_params(raw, *, length, token_size, hidden_size, num_layers):
    """Fold proj into layer 0 and build the merged, permuted kernel weights.

    Per layer l:
      R : (K_l, G) single merged input-to-gate weight, consumed as Z_t @ R where
          Z_t = [input(pos t) | input(pos L-1-t)]   (K_0 = 2*token_size, K_l = 4H)
      b : (1, G) combined bias (fwd bias in fwd columns, bwd bias in bwd columns)
      whh : (2H, G) block-structured recurrent weight, bf16.
    Gate k of direction d maps to columns [(2k+d)H, (2k+d+1)H).
    """
    H = hidden_size
    G = 8 * H
    L = length
    layers = []
    for l in range(num_layers):
        z_rows = 2 * token_size if l == 0 else 4 * H
        R = jnp.zeros((z_rows, G), jnp.float32)
        b = jnp.zeros((1, G), jnp.float32)
        whh = jnp.zeros((2 * H, G), jnp.float32)
        for d in range(2):
            p = raw["lstm"][l][d]
            w_in_t = p["w_ih"].T                           # (in, 4H), gate order i,f,g,o
            bias = p["b_ih"] + p["b_hh"]                   # (4H,)
            if l == 0:                                     # fold proj_layer (exact)
                bias = bias + raw["proj_b"] @ w_in_t
                w_in_t = raw["proj_w_t"] @ w_in_t          # (token_size, 4H)
            whh_t = p["w_hh"].T                            # (H, 4H)

            for k in range(4):                             # gate k -> columns (2k+d)*H
                col = (2 * k + d) * H
                src = w_in_t[:, k * H:(k + 1) * H]
                if l == 0:
                    if d == 0:   # fwd gates read x(pos t)     -> Z rows [0, T)
                        R = R.at[0:token_size, col:col + H].set(src)
                    else:        # bwd gates read x(pos L-1-t) -> Z rows [T, 2T)
                        R = R.at[token_size:2 * token_size, col:col + H].set(src)
                else:
                    # Z_t = [ h_fwd(t) | h_bwd(L-1-t) | h_fwd(L-1-t) | h_bwd(t) ]
                    if d == 0:   # fwd gates need [h_fwd(t), h_bwd(t)] -> rows [0,H) & [3H,4H)
                        R = R.at[0:H, col:col + H].set(src[0:H, :])
                        R = R.at[3 * H:4 * H, col:col + H].set(src[H:2 * H, :])
                    else:        # bwd gates need [h_fwd(L-1-t), h_bwd(L-1-t)] -> [2H,3H) & [H,2H)
                        R = R.at[2 * H:3 * H, col:col + H].set(src[0:H, :])
                        R = R.at[H:2 * H, col:col + H].set(src[H:2 * H, :])
                b = b.at[0, col:col + H].set(bias[k * H:(k + 1) * H])
                whh = whh.at[d * H:(d + 1) * H, col:col + H].set(whh_t[:, k * H:(k + 1) * H])
        layers.append({"r": R, "b": b, "whh": whh.astype(jnp.bfloat16)})

    # fc weights permuted so step t of the last layer multiplies
    # [fc rows for (pos t, fwd) | fc rows for (pos L-1-t, bwd)].
    fcv = raw["fc_w_t"][:, 0]
    fcw_perm = jnp.zeros((L, 2 * H), jnp.float32)
    for t in range(L):
        rb = L - 1 - t
        fcw_perm = fcw_perm.at[t, 0:H].set(fcv[t * 2 * H: t * 2 * H + H])
        fcw_perm = fcw_perm.at[t, H:2 * H].set(fcv[rb * 2 * H + H: rb * 2 * H + 2 * H])
    return {"layers": layers, "fcw_perm": fcw_perm, "fc_b": raw["fc_b"].astype(jnp.float32)}


# --------------------------------- forward --------------------------------- #

@functools.partial(jax.jit, static_argnames=("num_layers", "hidden_size"))
def rnn_reg_forward(packed, X, labels=None, *, num_layers=2, hidden_size=32):
    """Replicates RNNREGModel.forward (eval mode) for the LSTM + proj_layer config."""
    B, L, T = X.shape
    H = hidden_size
    B_pad = max(8, ((B + 7) // 8) * 8)      # sublane-align the batch dimension

    Xf = X.astype(jnp.float32)
    if B_pad != B:
        Xf = jnp.pad(Xf, ((0, B_pad - B), (0, 0), (0, 0)))

    # Paired layer-0 input [x(pos t) | x(pos L-1-t)], rows ordered (position, batch):
    # this makes the merged projection produce combined per-step pre-gates directly.
    x_pair = jnp.concatenate([Xf, Xf[:, ::-1, :]], axis=-1)          # (B_pad, L, 2T)
    xz = jnp.transpose(x_pair, (1, 0, 2)).reshape(L * B_pad, 2 * T)  # (L*B_pad, 2T)

    args = [xz]
    for l in range(num_layers):
        p = packed["layers"][l]
        args += [p["r"], p["b"], p["whh"]]
    args += [packed["fcw_perm"], packed["fc_b"]]

    logits_pad = pl.pallas_call(
        make_fused_kernel(L, B_pad, H, num_layers),
        out_shape=jax.ShapeDtypeStruct((B_pad, 1), jnp.float32),
        in_specs=[pl.BlockSpec(memory_space=pltpu.MemorySpace.VMEM)] * len(args),
        out_specs=pl.BlockSpec(memory_space=pltpu.MemorySpace.VMEM),
    )(*args)
    logits = logits_pad[:B]                 # drop padded batch rows

    outputs = (logits,)
    if labels is not None:
        loss = jnp.mean((jnp.squeeze(logits) - labels.astype(jnp.float32)) ** 2)
        outputs = (loss,) + outputs
    return outputs


# ----------------------------- pure-JAX reference --------------------------- #

def reference_forward(raw, X, labels, *, num_layers, hidden_size):
    B, L, _ = X.shape
    H = hidden_size
    layer_in = X.astype(jnp.float32) @ raw["proj_w_t"] + raw["proj_b"]
    for l in range(num_layers):
        outs = []
        for d in range(2):
            p = raw["lstm"][l][d]
            seq = layer_in if d == 0 else layer_in[:, ::-1, :]
            h = jnp.zeros((B, H), jnp.float32)
            c = jnp.zeros((B, H), jnp.float32)
            b = p["b_ih"] + p["b_hh"]
            hs = []
            for t in range(L):
                g = seq[:, t, :] @ p["w_ih"].T + h @ p["w_hh"].T + b
                i = jax.nn.sigmoid(g[:, 0:H])
                f = jax.nn.sigmoid(g[:, H:2 * H])
                gg = jnp.tanh(g[:, 2 * H:3 * H])
                o = jax.nn.sigmoid(g[:, 3 * H:4 * H])
                c = f * c + i * gg
                h = o * jnp.tanh(c)
                hs.append(h)
            hs = jnp.stack(hs, axis=1)
            if d == 1:
                hs = hs[:, ::-1, :]
            outs.append(hs)
        layer_in = jnp.concatenate(outs, axis=-1)
        # inter-layer dropout(p=0.1) omitted: inactive at inference time.
    flat = layer_in.reshape(B, L * 2 * H)
    logits = flat @ raw["fc_w_t"] + raw["fc_b"]
    loss = jnp.mean((jnp.squeeze(logits) - labels.astype(jnp.float32)) ** 2)
    return loss, logits


# ----------------------------------- main ----------------------------------- #

if __name__ == "__main__":
    LENGTH = 8        # sequence length
    TOKEN_SIZE = 16   # input feature size
    EMBED_SIZE = 16   # proj_layer output size
    HIDDEN = 32       # LSTM hidden size per direction
    NUM_LAYERS = 2
    BATCH = 2

    key = jax.random.PRNGKey(0)
    pkey, xkey, lkey = jax.random.split(key, 3)

    raw = init_params(pkey, LENGTH, TOKEN_SIZE, EMBED_SIZE, HIDDEN, NUM_LAYERS)
    packed = pack_params(raw, length=LENGTH, token_size=TOKEN_SIZE,
                         hidden_size=HIDDEN, num_layers=NUM_LAYERS)
    X = jax.random.normal(xkey, (BATCH, LENGTH, TOKEN_SIZE), jnp.float32)
    labels = jax.random.normal(lkey, (BATCH,), jnp.float32)

    loss, logits = rnn_reg_forward(
        packed, X, labels, num_layers=NUM_LAYERS, hidden_size=HIDDEN)
    jax.block_until_ready((loss, logits))

    assert logits.shape == (BATCH, 1)
    assert loss.shape == ()

    # Correctness check against a pure-JAX (PyTorch-equivalent) f32 reference.
    # Tolerance 2e-2: the recurrent matmul uses bf16 operands (f32 accumulation).
    ref_loss, ref_logits = reference_forward(
        raw, X, labels, num_layers=NUM_LAYERS, hidden_size=HIDDEN)
    jax.block_until_ready((ref_loss, ref_logits))
    assert bool(jnp.allclose(logits, ref_logits, rtol=2e-2, atol=2e-2))
    assert bool(jnp.allclose(loss, ref_loss, rtol=2e-2, atol=2e-2))

    print("KERNEL_OK")
</pallas_src>

<mosaic_0001>
module attributes {stable_mosaic.version = 11 : i64} {
  func.func @kernel(%arg0: memref<64x32xf32, #tpu.memory_space<vmem>>, %arg1: memref<32x256xf32, #tpu.memory_space<vmem>>, %arg2: memref<1x256xf32, #tpu.memory_space<vmem>>, %arg3: memref<64x256xbf16, #tpu.memory_space<vmem>>, %arg4: memref<128x256xf32, #tpu.memory_space<vmem>>, %arg5: memref<1x256xf32, #tpu.memory_space<vmem>>, %arg6: memref<64x256xbf16, #tpu.memory_space<vmem>>, %arg7: memref<8x64xf32, #tpu.memory_space<vmem>>, %arg8: memref<1x1xf32, #tpu.memory_space<vmem>>, %arg9: memref<8x1xf32, #tpu.memory_space<vmem>>) attributes {dimension_semantics = [], scalar_prefetch = 0 : i64, scratch_operands = 0 : i64, tpu.core_type = #tpu.core_type<tc>} {
    %0 = tpu.iota {dimensions = array<i32: 1>} : vector<8x256xi32>
    %c128_i32 = arith.constant 128 : i32
    %1 = vector.broadcast %c128_i32 : i32 to vector<8x256xi32>
    %2 = arith.cmpi sge, %0, %1 : vector<8x256xi32>
    %c192_i32 = arith.constant 192 : i32
    %3 = vector.broadcast %c192_i32 : i32 to vector<8x256xi32>
    %4 = arith.cmpi slt, %0, %3 : vector<8x256xi32>
    %5 = arith.andi %2, %4 : vector<8x256xi1>
    %c0 = arith.constant 0 : index
    %c0_0 = arith.constant 0 : index
    %6 = vector.load %arg0[%c0, %c0_0] : memref<64x32xf32, #tpu.memory_space<vmem>>, vector<64x32xf32>
    %c0_1 = arith.constant 0 : index
    %c0_2 = arith.constant 0 : index
    %7 = vector.load %arg1[%c0_1, %c0_2] : memref<32x256xf32, #tpu.memory_space<vmem>>, vector<32x256xf32>
    %cst = arith.constant dense<0.000000e+00> : vector<64x256xf32>
    %8 = tpu.matmul %6, %7, %cst {dimension_numbers = #tpu.dot_dimension_numbers<[1], [0], [0], [1], [0, 0, 1, 1], [], []>} : vector<64x32xf32>, vector<32x256xf32>, vector<64x256xf32> -> vector<64x256xf32>
    %c0_3 = arith.constant 0 : index
    %c0_4 = arith.constant 0 : index
    %9 = vector.load %arg2[%c0_3, %c0_4] : memref<1x256xf32, #tpu.memory_space<vmem>>, vector<1x256xf32>
    %10 = vector.broadcast %9 : vector<1x256xf32> to vector<64x256xf32>
    %11 = arith.addf %8, %10 : vector<64x256xf32>
    %12 = vector.extract_strided_slice %11 {offsets = [0, 0], sizes = [8, 256], strides = [1, 1]} : vector<64x256xf32> to vector<8x256xf32>
    %13 = vector.extract_strided_slice %11 {offsets = [8, 0], sizes = [8, 256], strides = [1, 1]} : vector<64x256xf32> to vector<8x256xf32>
    %14 = vector.extract_strided_slice %11 {offsets = [16, 0], sizes = [8, 256], strides = [1, 1]} : vector<64x256xf32> to vector<8x256xf32>
    %15 = vector.extract_strided_slice %11 {offsets = [24, 0], sizes = [8, 256], strides = [1, 1]} : vector<64x256xf32> to vector<8x256xf32>
    %16 = vector.extract_strided_slice %11 {offsets = [32, 0], sizes = [8, 256], strides = [1, 1]} : vector<64x256xf32> to vector<8x256xf32>
    %17 = vector.extract_strided_slice %11 {offsets = [40, 0], sizes = [8, 256], strides = [1, 1]} : vector<64x256xf32> to vector<8x256xf32>
    %18 = vector.extract_strided_slice %11 {offsets = [48, 0], sizes = [8, 256], strides = [1, 1]} : vector<64x256xf32> to vector<8x256xf32>
    %19 = vector.extract_strided_slice %11 {offsets = [56, 0], sizes = [8, 256], strides = [1, 1]} : vector<64x256xf32> to vector<8x256xf32>
    %c0_5 = arith.constant 0 : index
    %c0_6 = arith.constant 0 : index
    %20 = vector.load %arg3[%c0_5, %c0_6] : memref<64x256xbf16, #tpu.memory_space<vmem>>, vector<64x256xbf16>
    %cst_7 = arith.constant 0.000000e+00 : f32
    %21 = vector.broadcast %cst_7 : f32 to vector<8x64xf32>
    %cst_8 = arith.constant 2.000000e+00 : f32
    %22 = vector.broadcast %cst_8 : f32 to vector<8x256xf32>
    %23 = arith.mulf %22, %12 : vector<8x256xf32>
    %24 = arith.select %5, %23, %12 : vector<8x256xi1>, vector<8x256xf32>
    %25 = arith.negf %24 : vector<8x256xf32>
    %26 = math.exp %25 : vector<8x256xf32>
    %cst_9 = arith.constant 1.000000e+00 : f32
    %27 = vector.broadcast %cst_9 : f32 to vector<8x256xf32>
    %28 = arith.addf %27, %26 : vector<8x256xf32>
    %29 = arith.divf %27, %28 : vector<8x256xf32>
    %cst_10 = arith.constant 2.000000e+00 : f32
    %30 = vector.broadcast %cst_10 : f32 to vector<8x256xf32>
    %31 = arith.mulf %30, %29 : vector<8x256xf32>
    %cst_11 = arith.constant 1.000000e+00 : f32
    %32 = vector.broadcast %cst_11 : f32 to vector<8x256xf32>
    %33 = arith.subf %31, %32 : vector<8x256xf32>
    %34 = arith.select %5, %33, %29 : vector<8x256xi1>, vector<8x256xf32>
    %35 = vector.extract_strided_slice %34 {offsets = [0, 0], sizes = [8, 64], strides = [1, 1]} : vector<8x256xf32> to vector<8x64xf32>
    %36 = vector.extract_strided_slice %34 {offsets = [0, 64], sizes = [8, 64], strides = [1, 1]} : vector<8x256xf32> to vector<8x64xf32>
    %37 = vector.extract_strided_slice %34 {offsets = [0, 128], sizes = [8, 64], strides = [1, 1]} : vector<8x256xf32> to vector<8x64xf32>
    %38 = vector.extract_strided_slice %34 {offsets = [0, 192], sizes = [8, 64], strides = [1, 1]} : vector<8x256xf32> to vector<8x64xf32>
    %39 = arith.mulf %36, %21 : vector<8x64xf32>
    %40 = arith.mulf %35, %37 : vector<8x64xf32>
    %41 = arith.addf %39, %40 : vector<8x64xf32>
    %42 = math.tanh %41 : vector<8x64xf32>
    %43 = arith.mulf %38, %42 : vector<8x64xf32>
    %44 = arith.truncf %43 : vector<8x64xf32> to vector<8x64xbf16>
    %cst_12 = arith.constant dense<0.000000e+00> : vector<8x256xf32>
    %45 = tpu.matmul %44, %20, %cst_12 {dimension_numbers = #tpu.dot_dimension_numbers<[1], [0], [0], [1], [0, 0, 1, 1], [], []>} : vector<8x64xbf16>, vector<64x256xbf16>, vector<8x256xf32> -> vector<8x256xf32>
    %46 = arith.addf %13, %45 : vector<8x256xf32>
    %cst_13 = arith.constant 2.000000e+00 : f32
    %47 = vector.broadcast %cst_13 : f32 to vector<8x256xf32>
    %48 = arith.mulf %47, %46 : vector<8x256xf32>
    %49 = arith.select %5, %48, %46 : vector<8x256xi1>, vector<8x256xf32>
    %50 = arith.negf %49 : vector<8x256xf32>
    %51 = math.exp %50 : vector<8x256xf32>
    %cst_14 = arith.constant 1.000000e+00 : f32
    %52 = vector.broadcast %cst_14 : f32 to vector<8x256xf32>
    %53 = arith.addf %52, %51 : vector<8x256xf32>
    %54 = arith.divf %52, %53 : vector<8x256xf32>
    %cst_15 = arith.constant 2.000000e+00 : f32
    %55 = vector.broadcast %cst_15 : f32 to vector<8x256xf32>
    %56 = arith.mulf %55, %54 : vector<8x256xf32>
    %cst_16 = arith.constant 1.000000e+00 : f32
    %57 = vector.broadcast %cst_16 : f32 to vector<8x256xf32>
    %58 = arith.subf %56, %57 : vector<8x256xf32>
    %59 = arith.select %5, %58, %54 : vector<8x256xi1>, vector<8x256xf32>
    %60 = vector.extract_strided_slice %59 {offsets = [0, 0], sizes = [8, 64], strides = [1, 1]} : vector<8x256xf32> to vector<8x64xf32>
    %61 = vector.extract_strided_slice %59 {offsets = [0, 64], sizes = [8, 64], strides = [1, 1]} : vector<8x256xf32> to vector<8x64xf32>
    %62 = vector.extract_strided_slice %59 {offsets = [0, 128], sizes = [8, 64], strides = [1, 1]} : vector<8x256xf32> to vector<8x64xf32>
    %63 = vector.extract_strided_slice %59 {offsets = [0, 192], sizes = [8, 64], strides = [1, 1]} : vector<8x256xf32> to vector<8x64xf32>
    %64 = arith.mulf %61, %41 : vector<8x64xf32>
    %65 = arith.mulf %60, %62 : vector<8x64xf32>
    %66 = arith.addf %64, %65 : vector<8x64xf32>
    %67 = math.tanh %66 : vector<8x64xf32>
    %68 = arith.mulf %63, %67 : vector<8x64xf32>
    %69 = arith.truncf %68 : vector<8x64xf32> to vector<8x64xbf16>
    %cst_17 = arith.constant dense<0.000000e+00> : vector<8x256xf32>
    %70 = tpu.matmul %69, %20, %cst_17 {dimension_numbers = #tpu.dot_dimension_numbers<[1], [0], [0], [1], [0, 0, 1, 1], [], []>} : vector<8x64xbf16>, vector<64x256xbf16>, vector<8x256xf32> -> vector<8x256xf32>
    %71 = arith.addf %14, %70 : vector<8x256xf32>
    %cst_18 = arith.constant 2.000000e+00 : f32
    %72 = vector.broadcast %cst_18 : f32 to vector<8x256xf32>
    %73 = arith.mulf %72, %71 : vector<8x256xf32>
    %74 = arith.select %5, %73, %71 : vector<8x256xi1>, vector<8x256xf32>
    %75 = arith.negf %74 : vector<8x256xf32>
    %76 = math.exp %75 : vector<8x256xf32>
    %cst_19 = arith.constant 1.000000e+00 : f32
    %77 = vector.broadcast %cst_19 : f32 to vector<8x256xf32>
    %78 = arith.addf %77, %76 : vector<8x256xf32>
    %79 = arith.divf %77, %78 : vector<8x256xf32>
    %cst_20 = arith.constant 2.000000e+00 : f32
    %80 = vector.broadcast %cst_20 : f32 to vector<8x256xf32>
    %81 = arith.mulf %80, %79 : vector<8x256xf32>
    %cst_21 = arith.constant 1.000000e+00 : f32
    %82 = vector.broadcast %cst_21 : f32 to vector<8x256xf32>
    %83 = arith.subf %81, %82 : vector<8x256xf32>
    %84 = arith.select %5, %83, %79 : vector<8x256xi1>, vector<8x256xf32>
    %85 = vector.extract_strided_slice %84 {offsets = [0, 0], sizes = [8, 64], strides = [1, 1]} : vector<8x256xf32> to vector<8x64xf32>
    %86 = vector.extract_strided_slice %84 {offsets = [0, 64], sizes = [8, 64], strides = [1, 1]} : vector<8x256xf32> to vector<8x64xf32>
    %87 = vector.extract_strided_slice %84 {offsets = [0, 128], sizes = [8, 64], strides = [1, 1]} : vector<8x256xf32> to vector<8x64xf32>
    %88 = vector.extract_strided_slice %84 {offsets = [0, 192], sizes = [8, 64], strides = [1, 1]} : vector<8x256xf32> to vector<8x64xf32>
    %89 = arith.mulf %86, %66 : vector<8x64xf32>
    %90 = arith.mulf %85, %87 : vector<8x64xf32>
    %91 = arith.addf %89, %90 : vector<8x64xf32>
    %92 = math.tanh %91 : vector<8x64xf32>
    %93 = arith.mulf %88, %92 : vector<8x64xf32>
    %94 = arith.truncf %93 : vector<8x64xf32> to vector<8x64xbf16>
    %cst_22 = arith.constant dense<0.000000e+00> : vector<8x256xf32>
    %95 = tpu.matmul %94, %20, %cst_22 {dimension_numbers = #tpu.dot_dimension_numbers<[1], [0], [0], [1], [0, 0, 1, 1], [], []>} : vector<8x64xbf16>, vector<64x256xbf16>, vector<8x256xf32> -> vector<8x256xf32>
    %96 = arith.addf %15, %95 : vector<8x256xf32>
    %cst_23 = arith.constant 2.000000e+00 : f32
    %97 = vector.broadcast %cst_23 : f32 to vector<8x256xf32>
    %98 = arith.mulf %97, %96 : vector<8x256xf32>
    %99 = arith.select %5, %98, %96 : vector<8x256xi1>, vector<8x256xf32>
    %100 = arith.negf %99 : vector<8x256xf32>
    %101 = math.exp %100 : vector<8x256xf32>
    %cst_24 = arith.constant 1.000000e+00 : f32
    %102 = vector.broadcast %cst_24 : f32 to vector<8x256xf32>
    %103 = arith.addf %102, %101 : vector<8x256xf32>
    %104 = arith.divf %102, %103 : vector<8x256xf32>
    %cst_25 = arith.constant 2.000000e+00 : f32
    %105 = vector.broadcast %cst_25 : f32 to vector<8x256xf32>
    %106 = arith.mulf %105, %104 : vector<8x256xf32>
    %cst_26 = arith.constant 1.000000e+00 : f32
    %107 = vector.broadcast %cst_26 : f32 to vector<8x256xf32>
    %108 = arith.subf %106, %107 : vector<8x256xf32>
    %109 = arith.select %5, %108, %104 : vector<8x256xi1>, vector<8x256xf32>
    %110 = vector.extract_strided_slice %109 {offsets = [0, 0], sizes = [8, 64], strides = [1, 1]} : vector<8x256xf32> to vector<8x64xf32>
    %111 = vector.extract_strided_slice %109 {offsets = [0, 64], sizes = [8, 64], strides = [1, 1]} : vector<8x256xf32> to vector<8x64xf32>
    %112 = vector.extract_strided_slice %109 {offsets = [0, 128], sizes = [8, 64], strides = [1, 1]} : vector<8x256xf32> to vector<8x64xf32>
    %113 = vector.extract_strided_slice %109 {offsets = [0, 192], sizes = [8, 64], strides = [1, 1]} : vector<8x256xf32> to vector<8x64xf32>
    %114 = arith.mulf %111, %91 : vector<8x64xf32>
    %115 = arith.mulf %110, %112 : vector<8x64xf32>
    %116 = arith.addf %114, %115 : vector<8x64xf32>
    %117 = math.tanh %116 : vector<8x64xf32>
    %118 = arith.mulf %113, %117 : vector<8x64xf32>
    %119 = arith.truncf %118 : vector<8x64xf32> to vector<8x64xbf16>
    %cst_27 = arith.constant dense<0.000000e+00> : vector<8x256xf32>
    %120 = tpu.matmul %119, %20, %cst_27 {dimension_numbers = #tpu.dot_dimension_numbers<[1], [0], [0], [1], [0, 0, 1, 1], [], []>} : vector<8x64xbf16>, vector<64x256xbf16>, vector<8x256xf32> -> vector<8x256xf32>
    %121 = arith.addf %16, %120 : vector<8x256xf32>
    %cst_28 = arith.constant 2.000000e+00 : f32
    %122 = vector.broadcast %cst_28 : f32 to vector<8x256xf32>
    %123 = arith.mulf %122, %121 : vector<8x256xf32>
    %124 = arith.select %5, %123, %121 : vector<8x256xi1>, vector<8x256xf32>
    %125 = arith.negf %124 : vector<8x256xf32>
    %126 = math.exp %125 : vector<8x256xf32>
    %cst_29 = arith.constant 1.000000e+00 : f32
    %127 = vector.broadcast %cst_29 : f32 to vector<8x256xf32>
    %128 = arith.addf %127, %126 : vector<8x256xf32>
    %129 = arith.divf %127, %128 : vector<8x256xf32>
    %cst_30 = arith.constant 2.000000e+00 : f32
    %130 = vector.broadcast %cst_30 : f32 to vector<8x256xf32>
    %131 = arith.mulf %130, %129 : vector<8x256xf32>
    %cst_31 = arith.constant 1.000000e+00 : f32
    %132 = vector.broadcast %cst_31 : f32 to vector<8x256xf32>
    %133 = arith.subf %131, %132 : vector<8x256xf32>
    %134 = arith.select %5, %133, %129 : vector<8x256xi1>, vector<8x256xf32>
    %135 = vector.extract_strided_slice %134 {offsets = [0, 0], sizes = [8, 64], strides = [1, 1]} : vector<8x256xf32> to vector<8x64xf32>
    %136 = vector.extract_strided_slice %134 {offsets = [0, 64], sizes = [8, 64], strides = [1, 1]} : vector<8x256xf32> to vector<8x64xf32>
    %137 = vector.extract_strided_slice %134 {offsets = [0, 128], sizes = [8, 64], strides = [1, 1]} : vector<8x256xf32> to vector<8x64xf32>
    %138 = vector.extract_strided_slice %134 {offsets = [0, 192], sizes = [8, 64], strides = [1, 1]} : vector<8x256xf32> to vector<8x64xf32>
    %139 = arith.mulf %136, %116 : vector<8x64xf32>
    %140 = arith.mulf %135, %137 : vector<8x64xf32>
    %141 = arith.addf %139, %140 : vector<8x64xf32>
    %142 = math.tanh %141 : vector<8x64xf32>
    %143 = arith.mulf %138, %142 : vector<8x64xf32>
    %144 = arith.truncf %143 : vector<8x64xf32> to vector<8x64xbf16>
    %cst_32 = arith.constant dense<0.000000e+00> : vector<8x256xf32>
    %145 = tpu.matmul %144, %20, %cst_32 {dimension_numbers = #tpu.dot_dimension_numbers<[1], [0], [0], [1], [0, 0, 1, 1], [], []>} : vector<8x64xbf16>, vector<64x256xbf16>, vector<8x256xf32> -> vector<8x256xf32>
    %146 = arith.addf %17, %145 : vector<8x256xf32>
    %cst_33 = arith.constant 2.000000e+00 : f32
    %147 = vector.broadcast %cst_33 : f32 to vector<8x256xf32>
    %148 = arith.mulf %147, %146 : vector<8x256xf32>
    %149 = arith.select %5, %148, %146 : vector<8x256xi1>, vector<8x256xf32>
    %150 = arith.negf %149 : vector<8x256xf32>
    %151 = math.exp %150 : vector<8x256xf32>
    %cst_34 = arith.constant 1.000000e+00 : f32
    %152 = vector.broadcast %cst_34 : f32 to vector<8x256xf32>
    %153 = arith.addf %152, %151 : vector<8x256xf32>
    %154 = arith.divf %152, %153 : vector<8x256xf32>
    %cst_35 = arith.constant 2.000000e+00 : f32
    %155 = vector.broadcast %cst_35 : f32 to vector<8x256xf32>
    %156 = arith.mulf %155, %154 : vector<8x256xf32>
    %cst_36 = arith.constant 1.000000e+00 : f32
    %157 = vector.broadcast %cst_36 : f32 to vector<8x256xf32>
    %158 = arith.subf %156, %157 : vector<8x256xf32>
    %159 = arith.select %5, %158, %154 : vector<8x256xi1>, vector<8x256xf32>
    %160 = vector.extract_strided_slice %159 {offsets = [0, 0], sizes = [8, 64], strides = [1, 1]} : vector<8x256xf32> to vector<8x64xf32>
    %161 = vector.extract_strided_slice %159 {offsets = [0, 64], sizes = [8, 64], strides = [1, 1]} : vector<8x256xf32> to vector<8x64xf32>
    %162 = vector.extract_strided_slice %159 {offsets = [0, 128], sizes = [8, 64], strides = [1, 1]} : vector<8x256xf32> to vector<8x64xf32>
    %163 = vector.extract_strided_slice %159 {offsets = [0, 192], sizes = [8, 64], strides = [1, 1]} : vector<8x256xf32> to vector<8x64xf32>
    %164 = arith.mulf %161, %141 : vector<8x64xf32>
    %165 = arith.mulf %160, %162 : vector<8x64xf32>
    %166 = arith.addf %164, %165 : vector<8x64xf32>
    %167 = math.tanh %166 : vector<8x64xf32>
    %168 = arith.mulf %163, %167 : vector<8x64xf32>
    %169 = arith.truncf %168 : vector<8x64xf32> to vector<8x64xbf16>
    %cst_37 = arith.constant dense<0.000000e+00> : vector<8x256xf32>
    %170 = tpu.matmul %169, %20, %cst_37 {dimension_numbers = #tpu.dot_dimension_numbers<[1], [0], [0], [1], [0, 0, 1, 1], [], []>} : vector<8x64xbf16>, vector<64x256xbf16>, vector<8x256xf32> -> vector<8x256xf32>
    %171 = arith.addf %18, %170 : vector<8x256xf32>
    %cst_38 = arith.constant 2.000000e+00 : f32
    %172 = vector.broadcast %cst_38 : f32 to vector<8x256xf32>
    %173 = arith.mulf %172, %171 : vector<8x256xf32>
    %174 = arith.select %5, %173, %171 : vector<8x256xi1>, vector<8x256xf32>
    %175 = arith.negf %174 : vector<8x256xf32>
    %176 = math.exp %175 : vector<8x256xf32>
    %cst_39 = arith.constant 1.000000e+00 : f32
    %177 = vector.broadcast %cst_39 : f32 to vector<8x256xf32>
    %178 = arith.addf %177, %176 : vector<8x256xf32>
    %179 = arith.divf %177, %178 : vector<8x256xf32>
    %cst_40 = arith.constant 2.000000e+00 : f32
    %180 = vector.broadcast %cst_40 : f32 to vector<8x256xf32>
    %181 = arith.mulf %180, %179 : vector<8x256xf32>
    %cst_41 = arith.constant 1.000000e+00 : f32
    %182 = vector.broadcast %cst_41 : f32 to vector<8x256xf32>
    %183 = arith.subf %181, %182 : vector<8x256xf32>
    %184 = arith.select %5, %183, %179 : vector<8x256xi1>, vector<8x256xf32>
    %185 = vector.extract_strided_slice %184 {offsets = [0, 0], sizes = [8, 64], strides = [1, 1]} : vector<8x256xf32> to vector<8x64xf32>
    %186 = vector.extract_strided_slice %184 {offsets = [0, 64], sizes = [8, 64], strides = [1, 1]} : vector<8x256xf32> to vector<8x64xf32>
    %187 = vector.extract_strided_slice %184 {offsets = [0, 128], sizes = [8, 64], strides = [1, 1]} : vector<8x256xf32> to vector<8x64xf32>
    %188 = vector.extract_strided_slice %184 {offsets = [0, 192], sizes = [8, 64], strides = [1, 1]} : vector<8x256xf32> to vector<8x64xf32>
    %189 = arith.mulf %186, %166 : vector<8x64xf32>
    %190 = arith.mulf %185, %187 : vector<8x64xf32>
    %191 = arith.addf %189, %190 : vector<8x64xf32>
    %192 = math.tanh %191 : vector<8x64xf32>
    %193 = arith.mulf %188, %192 : vector<8x64xf32>
    %194 = arith.truncf %193 : vector<8x64xf32> to vector<8x64xbf16>
    %cst_42 = arith.constant dense<0.000000e+00> : vector<8x256xf32>
    %195 = tpu.matmul %194, %20, %cst_42 {dimension_numbers = #tpu.dot_dimension_numbers<[1], [0], [0], [1], [0, 0, 1, 1], [], []>} : vector<8x64xbf16>, vector<64x256xbf16>, vector<8x256xf32> -> vector<8x256xf32>
    %196 = arith.addf %19, %195 : vector<8x256xf32>
    %cst_43 = arith.constant 2.000000e+00 : f32
    %197 = vector.broadcast %cst_43 : f32 to vector<8x256xf32>
    %198 = arith.mulf %197, %196 : vector<8x256xf32>
    %199 = arith.select %5, %198, %196 : vector<8x256xi1>, vector<8x256xf32>
    %200 = arith.negf %199 : vector<8x256xf32>
    %201 = math.exp %200 : vector<8x256xf32>
    %cst_44 = arith.constant 1.000000e+00 : f32
    %202 = vector.broadcast %cst_44 : f32 to vector<8x256xf32>
    %203 = arith.addf %202, %201 : vector<8x256xf32>
    %204 = arith.divf %202, %203 : vector<8x256xf32>
    %cst_45 = arith.constant 2.000000e+00 : f32
    %205 = vector.broadcast %cst_45 : f32 to vector<8x256xf32>
    %206 = arith.mulf %205, %204 : vector<8x256xf32>
    %cst_46 = arith.constant 1.000000e+00 : f32
    %207 = vector.broadcast %cst_46 : f32 to vector<8x256xf32>
    %208 = arith.subf %206, %207 : vector<8x256xf32>
    %209 = arith.select %5, %208, %204 : vector<8x256xi1>, vector<8x256xf32>
    %210 = vector.extract_strided_slice %209 {offsets = [0, 0], sizes = [8, 64], strides = [1, 1]} : vector<8x256xf32> to vector<8x64xf32>
    %211 = vector.extract_strided_slice %209 {offsets = [0, 64], sizes = [8, 64], strides = [1, 1]} : vector<8x256xf32> to vector<8x64xf32>
    %212 = vector.extract_strided_slice %209 {offsets = [0, 128], sizes = [8, 64], strides = [1, 1]} : vector<8x256xf32> to vector<8x64xf32>
    %213 = vector.extract_strided_slice %209 {offsets = [0, 192], sizes = [8, 64], strides = [1, 1]} : vector<8x256xf32> to vector<8x64xf32>
    %214 = arith.mulf %211, %191 : vector<8x64xf32>
    %215 = arith.mulf %210, %212 : vector<8x64xf32>
    %216 = arith.addf %214, %215 : vector<8x64xf32>
    %217 = math.tanh %216 : vector<8x64xf32>
    %218 = arith.mulf %213, %217 : vector<8x64xf32>
    %219 = tpu.concatenate %43, %218 in 1 : vector<8x64xf32>, vector<8x64xf32> -> vector<8x128xf32>
    %220 = tpu.concatenate %68, %193 in 1 : vector<8x64xf32>, vector<8x64xf32> -> vector<8x128xf32>
    %221 = tpu.concatenate %93, %168 in 1 : vector<8x64xf32>, vector<8x64xf32> -> vector<8x128xf32>
    %222 = tpu.concatenate %118, %143 in 1 : vector<8x64xf32>, vector<8x64xf32> -> vector<8x128xf32>
    %223 = tpu.concatenate %143, %118 in 1 : vector<8x64xf32>, vector<8x64xf32> -> vector<8x128xf32>
    %224 = tpu.concatenate %168, %93 in 1 : vector<8x64xf32>, vector<8x64xf32> -> vector<8x128xf32>
    %225 = tpu.concatenate %193, %68 in 1 : vector<8x64xf32>, vector<8x64xf32> -> vector<8x128xf32>
    %226 = tpu.concatenate %218, %43 in 1 : vector<8x64xf32>, vector<8x64xf32> -> vector<8x128xf32>
    %227 = tpu.concatenate %219, %220, %221, %222, %223, %224, %225, %226 in 0 : vector<8x128xf32>, vector<8x128xf32>, vector<8x128xf32>, vector<8x128xf32>, vector<8x128xf32>, vector<8x128xf32>, vector<8x128xf32>, vector<8x128xf32> -> vector<64x128xf32>
    %c0_47 = arith.constant 0 : index
    %c0_48 = arith.constant 0 : index
    %228 = vector.load %arg4[%c0_47, %c0_48] : memref<128x256xf32, #tpu.memory_space<vmem>>, vector<128x256xf32>
    %cst_49 = arith.constant dense<0.000000e+00> : vector<64x256xf32>
    %229 = tpu.matmul %227, %228, %cst_49 {dimension_numbers = #tpu.dot_dimension_numbers<[1], [0], [0], [1], [0, 0, 1, 1], [], []>} : vector<64x128xf32>, vector<128x256xf32>, vector<64x256xf32> -> vector<64x256xf32>
    %c0_50 = arith.constant 0 : index
    %c0_51 = arith.constant 0 : index
    %230 = vector.load %arg5[%c0_50, %c0_51] : memref<1x256xf32, #tpu.memory_space<vmem>>, vector<1x256xf32>
    %231 = vector.broadcast %230 : vector<1x256xf32> to vector<64x256xf32>
    %232 = arith.addf %229, %231 : vector<64x256xf32>
    %233 = vector.extract_strided_slice %232 {offsets = [0, 0], sizes = [8, 256], strides = [1, 1]} : vector<64x256xf32> to vector<8x256xf32>
    %234 = vector.extract_strided_slice %232 {offsets = [8, 0], sizes = [8, 256], strides = [1, 1]} : vector<64x256xf32> to vector<8x256xf32>
    %235 = vector.extract_strided_slice %232 {offsets = [16, 0], sizes = [8, 256], strides = [1, 1]} : vector<64x256xf32> to vector<8x256xf32>
    %236 = vector.extract_strided_slice %232 {offsets = [24, 0], sizes = [8, 256], strides = [1, 1]} : vector<64x256xf32> to vector<8x256xf32>
    %237 = vector.extract_strided_slice %232 {offsets = [32, 0], sizes = [8, 256], strides = [1, 1]} : vector<64x256xf32> to vector<8x256xf32>
    %238 = vector.extract_strided_slice %232 {offsets = [40, 0], sizes = [8, 256], strides = [1, 1]} : vector<64x256xf32> to vector<8x256xf32>
    %239 = vector.extract_strided_slice %232 {offsets = [48, 0], sizes = [8, 256], strides = [1, 1]} : vector<64x256xf32> to vector<8x256xf32>
    %240 = vector.extract_strided_slice %232 {offsets = [56, 0], sizes = [8, 256], strides = [1, 1]} : vector<64x256xf32> to vector<8x256xf32>
    %c0_52 = arith.constant 0 : index
    %c0_53 = arith.constant 0 : index
    %241 = vector.load %arg6[%c0_52, %c0_53] : memref<64x256xbf16, #tpu.memory_space<vmem>>, vector<64x256xbf16>
    %cst_54 = arith.constant 0.000000e+00 : f32
    %242 = vector.broadcast %cst_54 : f32 to vector<8x64xf32>
    %cst_55 = arith.constant 2.000000e+00 : f32
    %243 = vector.broadcast %cst_55 : f32 to vector<8x256xf32>
    %244 = arith.mulf %243, %233 : vector<8x256xf32>
    %245 = arith.select %5, %244, %233 : vector<8x256xi1>, vector<8x256xf32>
    %246 = arith.negf %245 : vector<8x256xf32>
    %247 = math.exp %246 : vector<8x256xf32>
    %cst_56 = arith.constant 1.000000e+00 : f32
    %248 = vector.broadcast %cst_56 : f32 to vector<8x256xf32>
    %249 = arith.addf %248, %247 : vector<8x256xf32>
    %250 = arith.divf %248, %249 : vector<8x256xf32>
    %cst_57 = arith.constant 2.000000e+00 : f32
    %251 = vector.broadcast %cst_57 : f32 to vector<8x256xf32>
    %252 = arith.mulf %251, %250 : vector<8x256xf32>
    %cst_58 = arith.constant 1.000000e+00 : f32
    %253 = vector.broadcast %cst_58 : f32 to vector<8x256xf32>
    %254 = arith.subf %252, %253 : vector<8x256xf32>
    %255 = arith.select %5, %254, %250 : vector<8x256xi1>, vector<8x256xf32>
    %256 = vector.extract_strided_slice %255 {offsets = [0, 0], sizes = [8, 64], strides = [1, 1]} : vector<8x256xf32> to vector<8x64xf32>
    %257 = vector.extract_strided_slice %255 {offsets = [0, 64], sizes = [8, 64], strides = [1, 1]} : vector<8x256xf32> to vector<8x64xf32>
    %258 = vector.extract_strided_slice %255 {offsets = [0, 128], sizes = [8, 64], strides = [1, 1]} : vector<8x256xf32> to vector<8x64xf32>
    %259 = vector.extract_strided_slice %255 {offsets = [0, 192], sizes = [8, 64], strides = [1, 1]} : vector<8x256xf32> to vector<8x64xf32>
    %260 = arith.mulf %257, %242 : vector<8x64xf32>
    %261 = arith.mulf %256, %258 : vector<8x64xf32>
    %262 = arith.addf %260, %261 : vector<8x64xf32>
    %263 = math.tanh %262 : vector<8x64xf32>
    %264 = arith.mulf %259, %263 : vector<8x64xf32>
    %265 = arith.truncf %264 : vector<8x64xf32> to vector<8x64xbf16>
    %cst_59 = arith.constant dense<0.000000e+00> : vector<8x256xf32>
    %266 = tpu.matmul %265, %241, %cst_59 {dimension_numbers = #tpu.dot_dimension_numbers<[1], [0], [0], [1], [0, 0, 1, 1], [], []>} : vector<8x64xbf16>, vector<64x256xbf16>, vector<8x256xf32> -> vector<8x256xf32>
    %267 = arith.addf %234, %266 : vector<8x256xf32>
    %cst_60 = arith.constant 2.000000e+00 : f32
    %268 = vector.broadcast %cst_60 : f32 to vector<8x256xf32>
    %269 = arith.mulf %268, %267 : vector<8x256xf32>
    %270 = arith.select %5, %269, %267 : vector<8x256xi1>, vector<8x256xf32>
    %271 = arith.negf %270 : vector<8x256xf32>
    %272 = math.exp %271 : vector<8x256xf32>
    %cst_61 = arith.constant 1.000000e+00 : f32
    %273 = vector.broadcast %cst_61 : f32 to vector<8x256xf32>
    %274 = arith.addf %273, %272 : vector<8x256xf32>
    %275 = arith.divf %273, %274 : vector<8x256xf32>
    %cst_62 = arith.constant 2.000000e+00 : f32
    %276 = vector.broadcast %cst_62 : f32 to vector<8x256xf32>
    %277 = arith.mulf %276, %275 : vector<8x256xf32>
    %cst_63 = arith.constant 1.000000e+00 : f32
    %278 = vector.broadcast %cst_63 : f32 to vector<8x256xf32>
    %279 = arith.subf %277, %278 : vector<8x256xf32>
    %280 = arith.select %5, %279, %275 : vector<8x256xi1>, vector<8x256xf32>
    %281 = vector.extract_strided_slice %280 {offsets = [0, 0], sizes = [8, 64], strides = [1, 1]} : vector<8x256xf32> to vector<8x64xf32>
    %282 = vector.extract_strided_slice %280 {offsets = [0, 64], sizes = [8, 64], strides = [1, 1]} : vector<8x256xf32> to vector<8x64xf32>
    %283 = vector.extract_strided_slice %280 {offsets = [0, 128], sizes = [8, 64], strides = [1, 1]} : vector<8x256xf32> to vector<8x64xf32>
    %284 = vector.extract_strided_slice %280 {offsets = [0, 192], sizes = [8, 64], strides = [1, 1]} : vector<8x256xf32> to vector<8x64xf32>
    %285 = arith.mulf %282, %262 : vector<8x64xf32>
    %286 = arith.mulf %281, %283 : vector<8x64xf32>
    %287 = arith.addf %285, %286 : vector<8x64xf32>
    %288 = math.tanh %287 : vector<8x64xf32>
    %289 = arith.mulf %284, %288 : vector<8x64xf32>
    %290 = arith.truncf %289 : vector<8x64xf32> to vector<8x64xbf16>
    %cst_64 = arith.constant dense<0.000000e+00> : vector<8x256xf32>
    %291 = tpu.matmul %290, %241, %cst_64 {dimension_numbers = #tpu.dot_dimension_numbers<[1], [0], [0], [1], [0, 0, 1, 1], [], []>} : vector<8x64xbf16>, vector<64x256xbf16>, vector<8x256xf32> -> vector<8x256xf32>
    %292 = arith.addf %235, %291 : vector<8x256xf32>
    %cst_65 = arith.constant 2.000000e+00 : f32
    %293 = vector.broadcast %cst_65 : f32 to vector<8x256xf32>
    %294 = arith.mulf %293, %292 : vector<8x256xf32>
    %295 = arith.select %5, %294, %292 : vector<8x256xi1>, vector<8x256xf32>
    %296 = arith.negf %295 : vector<8x256xf32>
    %297 = math.exp %296 : vector<8x256xf32>
    %cst_66 = arith.constant 1.000000e+00 : f32
    %298 = vector.broadcast %cst_66 : f32 to vector<8x256xf32>
    %299 = arith.addf %298, %297 : vector<8x256xf32>
    %300 = arith.divf %298, %299 : vector<8x256xf32>
    %cst_67 = arith.constant 2.000000e+00 : f32
    %301 = vector.broadcast %cst_67 : f32 to vector<8x256xf32>
    %302 = arith.mulf %301, %300 : vector<8x256xf32>
    %cst_68 = arith.constant 1.000000e+00 : f32
    %303 = vector.broadcast %cst_68 : f32 to vector<8x256xf32>
    %304 = arith.subf %302, %303 : vector<8x256xf32>
    %305 = arith.select %5, %304, %300 : vector<8x256xi1>, vector<8x256xf32>
    %306 = vector.extract_strided_slice %305 {offsets = [0, 0], sizes = [8, 64], strides = [1, 1]} : vector<8x256xf32> to vector<8x64xf32>
    %307 = vector.extract_strided_slice %305 {offsets = [0, 64], sizes = [8, 64], strides = [1, 1]} : vector<8x256xf32> to vector<8x64xf32>
    %308 = vector.extract_strided_slice %305 {offsets = [0, 128], sizes = [8, 64], strides = [1, 1]} : vector<8x256xf32> to vector<8x64xf32>
    %309 = vector.extract_strided_slice %305 {offsets = [0, 192], sizes = [8, 64], strides = [1, 1]} : vector<8x256xf32> to vector<8x64xf32>
    %310 = arith.mulf %307, %287 : vector<8x64xf32>
    %311 = arith.mulf %306, %308 : vector<8x64xf32>
    %312 = arith.addf %310, %311 : vector<8x64xf32>
    %313 = math.tanh %312 : vector<8x64xf32>
    %314 = arith.mulf %309, %313 : vector<8x64xf32>
    %315 = arith.truncf %314 : vector<8x64xf32> to vector<8x64xbf16>
    %cst_69 = arith.constant dense<0.000000e+00> : vector<8x256xf32>
    %316 = tpu.matmul %315, %241, %cst_69 {dimension_numbers = #tpu.dot_dimension_numbers<[1], [0], [0], [1], [0, 0, 1, 1], [], []>} : vector<8x64xbf16>, vector<64x256xbf16>, vector<8x256xf32> -> vector<8x256xf32>
    %317 = arith.addf %236, %316 : vector<8x256xf32>
    %cst_70 = arith.constant 2.000000e+00 : f32
    %318 = vector.broadcast %cst_70 : f32 to vector<8x256xf32>
    %319 = arith.mulf %318, %317 : vector<8x256xf32>
    %320 = arith.select %5, %319, %317 : vector<8x256xi1>, vector<8x256xf32>
    %321 = arith.negf %320 : vector<8x256xf32>
    %322 = math.exp %321 : vector<8x256xf32>
    %cst_71 = arith.constant 1.000000e+00 : f32
    %323 = vector.broadcast %cst_71 : f32 to vector<8x256xf32>
    %324 = arith.addf %323, %322 : vector<8x256xf32>
    %325 = arith.divf %323, %324 : vector<8x256xf32>
    %cst_72 = arith.constant 2.000000e+00 : f32
    %326 = vector.broadcast %cst_72 : f32 to vector<8x256xf32>
    %327 = arith.mulf %326, %325 : vector<8x256xf32>
    %cst_73 = arith.constant 1.000000e+00 : f32
    %328 = vector.broadcast %cst_73 : f32 to vector<8x256xf32>
    %329 = arith.subf %327, %328 : vector<8x256xf32>
    %330 = arith.select %5, %329, %325 : vector<8x256xi1>, vector<8x256xf32>
    %331 = vector.extract_strided_slice %330 {offsets = [0, 0], sizes = [8, 64], strides = [1, 1]} : vector<8x256xf32> to vector<8x64xf32>
    %332 = vector.extract_strided_slice %330 {offsets = [0, 64], sizes = [8, 64], strides = [1, 1]} : vector<8x256xf32> to vector<8x64xf32>
    %333 = vector.extract_strided_slice %330 {offsets = [0, 128], sizes = [8, 64], strides = [1, 1]} : vector<8x256xf32> to vector<8x64xf32>
    %334 = vector.extract_strided_slice %330 {offsets = [0, 192], sizes = [8, 64], strides = [1, 1]} : vector<8x256xf32> to vector<8x64xf32>
    %335 = arith.mulf %332, %312 : vector<8x64xf32>
    %336 = arith.mulf %331, %333 : vector<8x64xf32>
    %337 = arith.addf %335, %336 : vector<8x64xf32>
    %338 = math.tanh %337 : vector<8x64xf32>
    %339 = arith.mulf %334, %338 : vector<8x64xf32>
    %340 = arith.truncf %339 : vector<8x64xf32> to vector<8x64xbf16>
    %cst_74 = arith.constant dense<0.000000e+00> : vector<8x256xf32>
    %341 = tpu.matmul %340, %241, %cst_74 {dimension_numbers = #tpu.dot_dimension_numbers<[1], [0], [0], [1], [0, 0, 1, 1], [], []>} : vector<8x64xbf16>, vector<64x256xbf16>, vector<8x256xf32> -> vector<8x256xf32>
    %342 = arith.addf %237, %341 : vector<8x256xf32>
    %cst_75 = arith.constant 2.000000e+00 : f32
    %343 = vector.broadcast %cst_75 : f32 to vector<8x256xf32>
    %344 = arith.mulf %343, %342 : vector<8x256xf32>
    %345 = arith.select %5, %344, %342 : vector<8x256xi1>, vector<8x256xf32>
    %346 = arith.negf %345 : vector<8x256xf32>
    %347 = math.exp %346 : vector<8x256xf32>
    %cst_76 = arith.constant 1.000000e+00 : f32
    %348 = vector.broadcast %cst_76 : f32 to vector<8x256xf32>
    %349 = arith.addf %348, %347 : vector<8x256xf32>
    %350 = arith.divf %348, %349 : vector<8x256xf32>
    %cst_77 = arith.constant 2.000000e+00 : f32
    %351 = vector.broadcast %cst_77 : f32 to vector<8x256xf32>
    %352 = arith.mulf %351, %350 : vector<8x256xf32>
    %cst_78 = arith.constant 1.000000e+00 : f32
    %353 = vector.broadcast %cst_78 : f32 to vector<8x256xf32>
    %354 = arith.subf %352, %353 : vector<8x256xf32>
    %355 = arith.select %5, %354, %350 : vector<8x256xi1>, vector<8x256xf32>
    %356 = vector.extract_strided_slice %355 {offsets = [0, 0], sizes = [8, 64], strides = [1, 1]} : vector<8x256xf32> to vector<8x64xf32>
    %357 = vector.extract_strided_slice %355 {offsets = [0, 64], sizes = [8, 64], strides = [1, 1]} : vector<8x256xf32> to vector<8x64xf32>
    %358 = vector.extract_strided_slice %355 {offsets = [0, 128], sizes = [8, 64], strides = [1, 1]} : vector<8x256xf32> to vector<8x64xf32>
    %359 = vector.extract_strided_slice %355 {offsets = [0, 192], sizes = [8, 64], strides = [1, 1]} : vector<8x256xf32> to vector<8x64xf32>
    %360 = arith.mulf %357, %337 : vector<8x64xf32>
    %361 = arith.mulf %356, %358 : vector<8x64xf32>
    %362 = arith.addf %360, %361 : vector<8x64xf32>
    %363 = math.tanh %362 : vector<8x64xf32>
    %364 = arith.mulf %359, %363 : vector<8x64xf32>
    %365 = arith.truncf %364 : vector<8x64xf32> to vector<8x64xbf16>
    %cst_79 = arith.constant dense<0.000000e+00> : vector<8x256xf32>
    %366 = tpu.matmul %365, %241, %cst_79 {dimension_numbers = #tpu.dot_dimension_numbers<[1], [0], [0], [1], [0, 0, 1, 1], [], []>} : vector<8x64xbf16>, vector<64x256xbf16>, vector<8x256xf32> -> vector<8x256xf32>
    %367 = arith.addf %238, %366 : vector<8x256xf32>
    %cst_80 = arith.constant 2.000000e+00 : f32
    %368 = vector.broadcast %cst_80 : f32 to vector<8x256xf32>
    %369 = arith.mulf %368, %367 : vector<8x256xf32>
    %370 = arith.select %5, %369, %367 : vector<8x256xi1>, vector<8x256xf32>
    %371 = arith.negf %370 : vector<8x256xf32>
    %372 = math.exp %371 : vector<8x256xf32>
    %cst_81 = arith.constant 1.000000e+00 : f32
    %373 = vector.broadcast %cst_81 : f32 to vector<8x256xf32>
    %374 = arith.addf %373, %372 : vector<8x256xf32>
    %375 = arith.divf %373, %374 : vector<8x256xf32>
    %cst_82 = arith.constant 2.000000e+00 : f32
    %376 = vector.broadcast %cst_82 : f32 to vector<8x256xf32>
    %377 = arith.mulf %376, %375 : vector<8x256xf32>
    %cst_83 = arith.constant 1.000000e+00 : f32
    %378 = vector.broadcast %cst_83 : f32 to vector<8x256xf32>
    %379 = arith.subf %377, %378 : vector<8x256xf32>
    %380 = arith.select %5, %379, %375 : vector<8x256xi1>, vector<8x256xf32>
    %381 = vector.extract_strided_slice %380 {offsets = [0, 0], sizes = [8, 64], strides = [1, 1]} : vector<8x256xf32> to vector<8x64xf32>
    %382 = vector.extract_strided_slice %380 {offsets = [0, 64], sizes = [8, 64], strides = [1, 1]} : vector<8x256xf32> to vector<8x64xf32>
    %383 = vector.extract_strided_slice %380 {offsets = [0, 128], sizes = [8, 64], strides = [1, 1]} : vector<8x256xf32> to vector<8x64xf32>
    %384 = vector.extract_strided_slice %380 {offsets = [0, 192], sizes = [8, 64], strides = [1, 1]} : vector<8x256xf32> to vector<8x64xf32>
    %385 = arith.mulf %382, %362 : vector<8x64xf32>
    %386 = arith.mulf %381, %383 : vector<8x64xf32>
    %387 = arith.addf %385, %386 : vector<8x64xf32>
    %388 = math.tanh %387 : vector<8x64xf32>
    %389 = arith.mulf %384, %388 : vector<8x64xf32>
    %390 = arith.truncf %389 : vector<8x64xf32> to vector<8x64xbf16>
    %cst_84 = arith.constant dense<0.000000e+00> : vector<8x256xf32>
    %391 = tpu.matmul %390, %241, %cst_84 {dimension_numbers = #tpu.dot_dimension_numbers<[1], [0], [0], [1], [0, 0, 1, 1], [], []>} : vector<8x64xbf16>, vector<64x256xbf16>, vector<8x256xf32> -> vector<8x256xf32>
    %392 = arith.addf %239, %391 : vector<8x256xf32>
    %cst_85 = arith.constant 2.000000e+00 : f32
    %393 = vector.broadcast %cst_85 : f32 to vector<8x256xf32>
    %394 = arith.mulf %393, %392 : vector<8x256xf32>
    %395 = arith.select %5, %394, %392 : vector<8x256xi1>, vector<8x256xf32>
    %396 = arith.negf %395 : vector<8x256xf32>
    %397 = math.exp %396 : vector<8x256xf32>
    %cst_86 = arith.constant 1.000000e+00 : f32
    %398 = vector.broadcast %cst_86 : f32 to vector<8x256xf32>
    %399 = arith.addf %398, %397 : vector<8x256xf32>
    %400 = arith.divf %398, %399 : vector<8x256xf32>
    %cst_87 = arith.constant 2.000000e+00 : f32
    %401 = vector.broadcast %cst_87 : f32 to vector<8x256xf32>
    %402 = arith.mulf %401, %400 : vector<8x256xf32>
    %cst_88 = arith.constant 1.000000e+00 : f32
    %403 = vector.broadcast %cst_88 : f32 to vector<8x256xf32>
    %404 = arith.subf %402, %403 : vector<8x256xf32>
    %405 = arith.select %5, %404, %400 : vector<8x256xi1>, vector<8x256xf32>
    %406 = vector.extract_strided_slice %405 {offsets = [0, 0], sizes = [8, 64], strides = [1, 1]} : vector<8x256xf32> to vector<8x64xf32>
    %407 = vector.extract_strided_slice %405 {offsets = [0, 64], sizes = [8, 64], strides = [1, 1]} : vector<8x256xf32> to vector<8x64xf32>
    %408 = vector.extract_strided_slice %405 {offsets = [0, 128], sizes = [8, 64], strides = [1, 1]} : vector<8x256xf32> to vector<8x64xf32>
    %409 = vector.extract_strided_slice %405 {offsets = [0, 192], sizes = [8, 64], strides = [1, 1]} : vector<8x256xf32> to vector<8x64xf32>
    %410 = arith.mulf %407, %387 : vector<8x64xf32>
    %411 = arith.mulf %406, %408 : vector<8x64xf32>
    %412 = arith.addf %410, %411 : vector<8x64xf32>
    %413 = math.tanh %412 : vector<8x64xf32>
    %414 = arith.mulf %409, %413 : vector<8x64xf32>
    %415 = arith.truncf %414 : vector<8x64xf32> to vector<8x64xbf16>
    %cst_89 = arith.constant dense<0.000000e+00> : vector<8x256xf32>
    %416 = tpu.matmul %415, %241, %cst_89 {dimension_numbers = #tpu.dot_dimension_numbers<[1], [0], [0], [1], [0, 0, 1, 1], [], []>} : vector<8x64xbf16>, vector<64x256xbf16>, vector<8x256xf32> -> vector<8x256xf32>
    %417 = arith.addf %240, %416 : vector<8x256xf32>
    %cst_90 = arith.constant 2.000000e+00 : f32
    %418 = vector.broadcast %cst_90 : f32 to vector<8x256xf32>
    %419 = arith.mulf %418, %417 : vector<8x256xf32>
    %420 = arith.select %5, %419, %417 : vector<8x256xi1>, vector<8x256xf32>
    %421 = arith.negf %420 : vector<8x256xf32>
    %422 = math.exp %421 : vector<8x256xf32>
    %cst_91 = arith.constant 1.000000e+00 : f32
    %423 = vector.broadcast %cst_91 : f32 to vector<8x256xf32>
    %424 = arith.addf %423, %422 : vector<8x256xf32>
    %425 = arith.divf %423, %424 : vector<8x256xf32>
    %cst_92 = arith.constant 2.000000e+00 : f32
    %426 = vector.broadcast %cst_92 : f32 to vector<8x256xf32>
    %427 = arith.mulf %426, %425 : vector<8x256xf32>
    %cst_93 = arith.constant 1.000000e+00 : f32
    %428 = vector.broadcast %cst_93 : f32 to vector<8x256xf32>
    %429 = arith.subf %427, %428 : vector<8x256xf32>
    %430 = arith.select %5, %429, %425 : vector<8x256xi1>, vector<8x256xf32>
    %431 = vector.extract_strided_slice %430 {offsets = [0, 0], sizes = [8, 64], strides = [1, 1]} : vector<8x256xf32> to vector<8x64xf32>
    %432 = vector.extract_strided_slice %430 {offsets = [0, 64], sizes = [8, 64], strides = [1, 1]} : vector<8x256xf32> to vector<8x64xf32>
    %433 = vector.extract_strided_slice %430 {offsets = [0, 128], sizes = [8, 64], strides = [1, 1]} : vector<8x256xf32> to vector<8x64xf32>
    %434 = vector.extract_strided_slice %430 {offsets = [0, 192], sizes = [8, 64], strides = [1, 1]} : vector<8x256xf32> to vector<8x64xf32>
    %435 = arith.mulf %432, %412 : vector<8x64xf32>
    %436 = arith.mulf %431, %433 : vector<8x64xf32>
    %437 = arith.addf %435, %436 : vector<8x64xf32>
    %438 = math.tanh %437 : vector<8x64xf32>
    %439 = arith.mulf %434, %438 : vector<8x64xf32>
    %c0_94 = arith.constant 0 : index
    %c0_95 = arith.constant 0 : index
    %440 = vector.load %arg7[%c0_94, %c0_95] : memref<8x64xf32, #tpu.memory_space<vmem>>, vector<8x64xf32>
    %cst_96 = arith.constant 0.000000e+00 : f32
    %441 = vector.broadcast %cst_96 : f32 to vector<8x64xf32>
    %442 = vector.extract_strided_slice %440 {offsets = [0, 0], sizes = [1, 64], strides = [1, 1]} : vector<8x64xf32> to vector<1x64xf32>
    %443 = vector.broadcast %442 : vector<1x64xf32> to vector<8x64xf32>
    %444 = arith.mulf %264, %443 : vector<8x64xf32>
    %445 = arith.addf %441, %444 : vector<8x64xf32>
    %446 = vector.extract_strided_slice %440 {offsets = [1, 0], sizes = [1, 64], strides = [1, 1]} : vector<8x64xf32> to vector<1x64xf32>
    %447 = vector.broadcast %446 : vector<1x64xf32> to vector<8x64xf32>
    %448 = arith.mulf %289, %447 : vector<8x64xf32>
    %449 = arith.addf %445, %448 : vector<8x64xf32>
    %450 = vector.extract_strided_slice %440 {offsets = [2, 0], sizes = [1, 64], strides = [1, 1]} : vector<8x64xf32> to vector<1x64xf32>
    %451 = vector.broadcast %450 : vector<1x64xf32> to vector<8x64xf32>
    %452 = arith.mulf %314, %451 : vector<8x64xf32>
    %453 = arith.addf %449, %452 : vector<8x64xf32>
    %454 = vector.extract_strided_slice %440 {offsets = [3, 0], sizes = [1, 64], strides = [1, 1]} : vector<8x64xf32> to vector<1x64xf32>
    %455 = vector.broadcast %454 : vector<1x64xf32> to vector<8x64xf32>
    %456 = arith.mulf %339, %455 : vector<8x64xf32>
    %457 = arith.addf %453, %456 : vector<8x64xf32>
    %458 = vector.extract_strided_slice %440 {offsets = [4, 0], sizes = [1, 64], strides = [1, 1]} : vector<8x64xf32> to vector<1x64xf32>
    %459 = vector.broadcast %458 : vector<1x64xf32> to vector<8x64xf32>
    %460 = arith.mulf %364, %459 : vector<8x64xf32>
    %461 = arith.addf %457, %460 : vector<8x64xf32>
    %462 = vector.extract_strided_slice %440 {offsets = [5, 0], sizes = [1, 64], strides = [1, 1]} : vector<8x64xf32> to vector<1x64xf32>
    %463 = vector.broadcast %462 : vector<1x64xf32> to vector<8x64xf32>
    %464 = arith.mulf %389, %463 : vector<8x64xf32>
    %465 = arith.addf %461, %464 : vector<8x64xf32>
    %466 = vector.extract_strided_slice %440 {offsets = [6, 0], sizes = [1, 64], strides = [1, 1]} : vector<8x64xf32> to vector<1x64xf32>
    %467 = vector.broadcast %466 : vector<1x64xf32> to vector<8x64xf32>
    %468 = arith.mulf %414, %467 : vector<8x64xf32>
    %469 = arith.addf %465, %468 : vector<8x64xf32>
    %470 = vector.extract_strided_slice %440 {offsets = [7, 0], sizes = [1, 64], strides = [1, 1]} : vector<8x64xf32> to vector<1x64xf32>
    %471 = vector.broadcast %470 : vector<1x64xf32> to vector<8x64xf32>
    %472 = arith.mulf %439, %471 : vector<8x64xf32>
    %473 = arith.addf %469, %472 : vector<8x64xf32>
    %cst_97 = arith.constant dense<0.000000e+00> : vector<8xf32>
    %474 = vector.multi_reduction <add>, %473, %cst_97 [1] : vector<8x64xf32> to vector<8xf32>
    %475 = vector.shape_cast %474 : vector<8xf32> to vector<8x1xf32>
    %c0_98 = arith.constant 0 : index
    %c0_99 = arith.constant 0 : index
    %476 = vector.load %arg8[%c0_98, %c0_99] : memref<1x1xf32, #tpu.memory_space<vmem>>, vector<1x1xf32>
    %477 = vector.broadcast %476 : vector<1x1xf32> to vector<8x1xf32>
    %478 = arith.addf %475, %477 : vector<8x1xf32>
    %c0_100 = arith.constant 0 : index
    %c0_101 = arith.constant 0 : index
    %479 = vector.load %arg9[%c0_100, %c0_101] : memref<8x1xf32, #tpu.memory_space<vmem>>, vector<8x1xf32>
    tpu.vector_store %arg9[%c0_100, %c0_101], %478 {strides = array<i32>} : memref<8x1xf32, #tpu.memory_space<vmem>>, vector<8x1xf32>,
    return
  }
}

</mosaic_0001>

<bundles_post_ra>
// kernel: rnn_reg_forward.1
= control target key start
LH: loop header
LB: loop body
LE: loop exit
PB: predicated region body
PF: predicated region fallthrough
CT: control target
= control target key end

     0   :  { %v2092_v3 = vmov 0.0   ;;  %vm72_vm0 = vcmask 261120   ;;  %v35_v10 = vlaneseq  ;;  %v2094_v39 = vmov 0   ;;  %s2850_s1 = inlined_call_operand.vmem [shape: f32[32,256], index: 1, kind: input, shape index: {}]   ;;  %s2851_s0 = inlined_call_operand.vmem [shape: f32[64,32], index: 0, kind: input, shape index: {}]   ;;  %s2852_s2 = inlined_call_operand.vmem [shape: f32[1,256], index: 2, kind: input, shape index: {}]   ;;  %s2853_s3 = inlined_call_operand.vmem [shape: bf16[64,256], index: 3, kind: input, shape index: {}]   ;;  %s2854_s4 = inlined_call_operand.vmem [shape: f32[128,256], index: 4, kind: input, shape index: {}]   ;;  %s2855_s5 = inlined_call_operand.vmem [shape: f32[1,256], index: 5, kind: input, shape index: {}]   ;;  %s2856_s6 = inlined_call_operand.vmem [shape: bf16[64,256], index: 6, kind: input, shape index: {}]   ;;  %s2857_s7 = inlined_call_operand.vmem [shape: f32[8,64], index: 7, kind: input, shape index: {}]   ;;  %s2858_s8 = inlined_call_operand.<no memory space> [shape: f32[1,1], index: 8, kind: input, shape index: {}]   ;;  %s2859_s9 = inlined_call_operand.vmem [shape: f32[8,1], index: 9, kind: output, shape index: {}]  }
   0x1   :  { %v59_v0 = vld [vmem:[%s2850_s1 + $0x38] sm:$0xff]  ;;  %v58_v1 = vld [vmem:[%s2850_s1 + $0x30] sm:$0xff]  ;;  %v57_v2 = vld [vmem:[%s2850_s1 + $0x28] sm:$0xff]  ;;  %161 = vmatprep.mubr.f32.mxu0 %v2092_v3  ;;  %329 = vmatprep.mubr.bf16.mxu1 %v2094_v39  ;;  %vm293_vm2 = vcmask 523264   ;;  %vm1796_vm3 = vcmask 7168  }
   0x2   :  { %121 = vmatprep.subr.mxu0 %v59_v0  ;;  %v56_v4 = vld [vmem:[%s2850_s1 + $0x20] sm:$0xff]  ;;  %v55_v5 = vld [vmem:[%s2850_s1 + $0x18] sm:$0xff]  ;;  %v54_v6 = vld [vmem:[%s2850_s1 + $0x10] sm:$0xff]  ;;  %v2175_v11 = vshrl.u32 %v35_v10, 7  ;;  %v36_v14 = vand.u32 127, %v35_v10 }
   0x3   :  { %122 = vmatpush1.msra.mxu0 %v58_v1  ;;  %v53_v7 = vld [vmem:[%s2850_s1 + $0x8] sm:$0xff]  ;;  %v52_v8 = vld [vmem:[%s2850_s1] sm:$0xff]  ;;  %v2208_v38 = vld [vmem:[%s2853_s3 + $0x34] ss:$8 sps:$4 sm:$0xff]  }
   0x4   :  { %123 = vmatprep.subr.mxu0 %v57_v2  ;;  %v44_v9 = vld [vmem:[%s2851_s0] sm:$0xff]  ;;  %v2178_v12 = vsub.s32 0, %v2175_v11  ;;  %v2181_v13 = vsub.s32 1, %v2175_v11  ;;  %v2192_v18 = vadd.s32 128, %v36_v14  ;;  %v45_v37 = vld [vmem:[%s2851_s0 + $0x8] sm:$0xff]  ;;  %305 = vmatprep.subr.bf16.mxu1 %v2208_v38 }
   0x5   :  { %124 = vmatpush1.msra.mxu0 %v56_v4  ;;  %v60_v15 = vld [vmem:[%s2852_s2] sm:$0x3]  ;;  %s2093_s2 = smov 64   ;;  %v2215_v40 = vld [vmem:[%s2853_s3 + $0x30] ss:$8 sps:$4 sm:$0xff]  }
   0x6   :  { %125 = vmatprep.subr.mxu0 %v55_v5  ;;  %v2187_v16 = vrot.slane %v60_v15, %v2178_v12  ;;  %v2190_v17 = vrot.slane %v60_v15, %v2181_v13  ;;  %vm41_vm1 = vcmp.lt.s32.totalorder %v2192_v18, 192  ;;  %v2222_v41 = vld [vmem:[%s2853_s3 + $0x24] ss:$8 sps:$4 sm:$0xff]   ;;  %306 = vmatpush1.bf16.msra.mxu1 %v2215_v40  ;;  %v2229_v42 = vld [vmem:[%s2853_s3 + $0x20] ss:$8 sps:$4 sm:$0xff]  }
   0x7   :  { %126 = vmatpush1.msra.mxu0 %v54_v6  ;;  %307 = vmatprep.subr.bf16.mxu1 %v2222_v41  ;;  %v2236_v43 = vld [vmem:[%s2853_s3 + $0x14] ss:$8 sps:$4 sm:$0xff]   ;;  %v2243_v44 = vld [vmem:[%s2853_s3 + $0x10] ss:$8 sps:$4 sm:$0xff]   ;;  %v2250_v45 = vld [vmem:[%s2853_s3 + $0x4] ss:$8 sps:$4 sm:$0xff]  }
   0x8   :  { %127 = vmatprep.subr.mxu0 %v53_v7  ;;  %v2257_v46 = vld [vmem:[%s2853_s3] ss:$8 sps:$4 sm:$0xff]  }
   0x9   :  { %128 = vmatpush1.msra.mxu0 %v52_v8 }
   0xa   :  { %1802 = vmatmul.mubr.msk.f32.vlgmr.msra.gmra.mxu0 %vm72_vm0, %v44_v9  ;;  %467 = vmatprep.subr.bf16.mxu0 %v2208_v38 }
   0xb   :  { %167 = vmatprep.mubr.f32.mxu0 %v2092_v3  ;;  %468 = vmatpush1.bf16.msra.mxu0 %v2215_v40 }
   0xc   :  { %469 = vmatprep.subr.bf16.mxu0 %v2222_v41  ;;  %308 = vmatpush1.bf16.msra.mxu1 %v2229_v42 }
   0xd   :  { %309 = vmatprep.subr.bf16.mxu1 %v2236_v43 }
   0xe   :  { %1803 = vmatmul.mubr.msk.f32.gmra.mxu0 %vm72_vm0, %v45_v37 }
   0xf   :  { %173 = vmatprep.mubr.f32.mxu0 %v2092_v3  ;;  %470 = vmatpush1.bf16.msra.mxu0 %v2229_v42 }
  0x10   :  { %471 = vmatprep.subr.bf16.mxu0 %v2236_v43  ;;  %310 = vmatpush1.bf16.msra.mxu1 %v2243_v44 }
  0x11   :  { %311 = vmatprep.subr.bf16.mxu1 %v2250_v45 }
  0x13   :  { %472 = vmatpush1.bf16.msra.mxu0 %v2243_v44 }
  0x14   :  { %473 = vmatprep.subr.bf16.mxu0 %v2250_v45  ;;  %312 = vmatpush1.bf16.msra.mxu1 %v2257_v46 }
  0x15   :  { %386 = vmatprep.subr.bf16.mxu1 %v2208_v38 }
  0x17   :  { %474 = vmatpush1.bf16.msra.mxu0 %v2257_v46 }
  0x18   :  { %629 = vmatprep.subr.bf16.mxu0 %v2208_v38 }
  0xca   :  { %v163_v19 = vpop.f32.mrf.mxu0 }
  0xcb   :  { %v164_v21 = vadd.f32 %v163_v19, %v2187_v16 }
  0xcc   :  { %v165_v20 = vpop.f32.mrf.mxu0 }
  0xcd   :  { %v166_v22 = vadd.f32 %v165_v20, %v2190_v17  ;;  %v1810_v24 = vmul.f32 -1.442695, %v164_v21  ;;  %v46_v21 = vld [vmem:[%s2851_s0 + $0x10] sm:$0xff] }
  0xce   :  { %v169_v54 = vpop.f32.mrf.mxu0  ;;  %1804 = vmatmul.mubr.msk.f32.gmra.mxu0 %vm72_vm0, %v46_v21 }
  0xcf   :  { %v219_v23 = vmul.f32 2.0, %v166_v22  ;;  %v170_v56 = vadd.f32 %v169_v54, %v2187_v16  ;;  %179 = vmatprep.mubr.f32.mxu0 %v2092_v3 }
  0xd0   :  { %v171_v55 = vpop.f32.mrf.mxu0 }
  0xd1   :  { %v221_v25 = vsel %vm41_vm1, %v219_v23, %v166_v22  ;;  %v172_v58 = vadd.f32 %v171_v55, %v2190_v17 }
  0xd2   :  { %v1811_v26 = vmul.f32 -1.442695, %v221_v25 }
  0xd4   :  { %1932 = vpow2.f32 %v1811_v26 }
  0xd5   :  { %1934 = vpow2.f32 %v1810_v24 }
  0xe1   :  { %v1933_v27 = vpop.eup %1932 }
  0xe2   :  { %v1935_v28 = vpop.eup %1934  ;;  %v229_v29 = vadd.f32 1.0, %v1933_v27 }
  0xe3   :  { %v228_v30 = vadd.f32 1.0, %v1935_v28 }
  0xe4   :  { %1936 = vrcp.f32 %v229_v29 }
  0xe5   :  { %1938 = vrcp.f32 %v228_v30 }
  0xf1   :  { %v1937_v31 = vpop.eup %1936 }
  0xf2   :  { %v235_v32 = vmul.f32 2.0, %v1937_v31  ;;  %v1939_v34 = vpop.eup %1938 }
  0xf3   :  { %v240_v47 = vmul.f32 0.0, %v1939_v34 }
  0xf4   :  { %v1813_v33 = vadd.f32 -1.0, %v235_v32 }
  0xf6   :  { %v239_v35 = vsel %vm41_vm1, %v1813_v33, %v1937_v31 }
  0xf7   :  { %v241_v36 = vmul.f32 %v1939_v34, %v239_v35 }
  0xf9   :  { %243 = vrot.lane.b32.xlu0 %v241_v36, %s2093_s2 }
 0x16b   :  { %v244_v48 = vpop.permute.xlu0 %243 }
 0x16c   :  { %v246_v49 = vadd.f32 %v244_v48, %v240_v47 }
 0x16e   :  { %1940 = vtanh.f32 %v246_v49 }
 0x17b   :  { %v1941_v50 = vpop.eup %1940 }
 0x17c   :  { %v2266_v51 = vmul.f32 %v1941_v50, %v239_v35 }
 0x17e   :  { %v249_v52 = vpack.c.bf16 %v2266_v51, %v2266_v51 }
 0x180   :  { %251 = vrot.lane.b32.xlu0 %v249_v52, %s2093_s2 }
 0x18e   :  { %v175_v29 = vpop.f32.mrf.mxu0 }
 0x18f   :  { %v176_v31 = vadd.f32 %v175_v29, %v2187_v16 }
 0x190   :  { %v177_v30 = vpop.f32.mrf.mxu0 }
 0x191   :  { %v178_v33 = vadd.f32 %v177_v30, %v2190_v17 }
 0x1f2   :  { %v252_v53 = vpop.permute.xlu0 %251 }
 0x1f3   :  { %1822 = vmatmul.mubr.msk.bf16.vlgmr.msra.gmra.mxu1 %vm293_vm2, %v252_v53 }
 0x1f4   :  { %387 = vmatpush1.bf16.msra.mxu1 %v2215_v40  ;;  %410 = vmatprep.mubr.bf16.mxu1 %v2094_v39 }
 0x1f5   :  { %388 = vmatprep.subr.bf16.mxu1 %v2222_v41 }
 0x1f8   :  { %389 = vmatpush1.bf16.msra.mxu1 %v2229_v42 }
 0x1f9   :  { %390 = vmatprep.subr.bf16.mxu1 %v2236_v43 }
 0x1fc   :  { %391 = vmatpush1.bf16.msra.mxu1 %v2243_v44 }
 0x1fd   :  { %392 = vmatprep.subr.bf16.mxu1 %v2250_v45 }
 0x200   :  { %393 = vmatpush1.bf16.msra.mxu1 %v2257_v46 }
 0x201   :  { %548 = vmatprep.subr.bf16.mxu1 %v2208_v38 }
 0x2b3   :  { %v331_v57 = vpop.f32.mrf.mxu1 }
 0x2b4   :  { %v338_v60 = vadd.f32 %v331_v57, %v170_v56 }
 0x2b5   :  { %v333_v59 = vpop.f32.mrf.mxu1 }
 0x2b6   :  { %v339_v61 = vadd.f32 %v333_v59, %v172_v58  ;;  %v1823_v1 = vmul.f32 -1.442695, %v338_v60 }
 0x2b7   :  { %v335_v62 = vpop.f32.mrf.mxu1 }
 0x2b8   :  { %v341_v63 = vmul.f32 2.0, %v339_v61 }
 0x2b9   :  { %v336_v0 = vpop.f32.mrf.mxu1 }
 0x2ba   :  { %v343_v2 = vsel %vm41_vm1, %v341_v63, %v339_v61  ;;  %v47_v63 = vld [vmem:[%s2851_s0 + $0x18] sm:$0xff]  ;;  %v48_v0 = vld [vmem:[%s2851_s0 + $0x20] sm:$0xff] }
 0x2bb   :  { %v1824_v4 = vmul.f32 -1.442695, %v343_v2  ;;  %1805 = vmatmul.mubr.msk.f32.gmra.mxu0 %vm72_vm0, %v47_v63  ;;  %v50_v2 = vld [vmem:[%s2851_s0 + $0x30] sm:$0xff] }
 0x2bc   :  { %185 = vmatprep.mubr.f32.mxu0 %v2092_v3 }
 0x2bd   :  { %1942 = vpow2.f32 %v1824_v4  ;;  %v51_v4 = vld [vmem:[%s2851_s0 + $0x38] sm:$0xff] }
 0x2be   :  { %1944 = vpow2.f32 %v1823_v1  ;;  %v49_v1 = vld [vmem:[%s2851_s0 + $0x28] sm:$0xff] }
 0x2bf   :  { %1806 = vmatmul.mubr.msk.f32.gmra.mxu0 %vm72_vm0, %v48_v0 }
 0x2c0   :  { %191 = vmatprep.mubr.f32.mxu0 %v2092_v3 }
 0x2c3   :  { %1807 = vmatmul.mubr.msk.f32.gmra.mxu0 %vm72_vm0, %v49_v1 }
 0x2c4   :  { %197 = vmatprep.mubr.f32.mxu0 %v2092_v3 }
 0x2c7   :  { %1808 = vmatmul.mubr.msk.f32.gmra.mxu0 %vm72_vm0, %v50_v2 }
 0x2c8   :  { %203 = vmatprep.mubr.f32.mxu0 %v2092_v3 }
 0x2ca   :  { %v1943_v5 = vpop.eup %1942 }
 0x2cb   :  { %v1945_v6 = vpop.eup %1944  ;;  %v351_v7 = vadd.f32 1.0, %v1943_v5  ;;  %1809 = vmatmul.mubr.msk.f32.gmra.mxu0 %vm72_vm0, %v51_v4 }
 0x2cc   :  { %v350_v8 = vadd.f32 1.0, %v1945_v6  ;;  %491 = vmatprep.mubr.bf16.mxu0 %v2094_v39 }
 0x2cd   :  { %1946 = vrcp.f32 %v351_v7 }
 0x2ce   :  { %1948 = vrcp.f32 %v350_v8 }
 0x2da   :  { %v1947_v9 = vpop.eup %1946 }
 0x2db   :  { %v357_v10 = vmul.f32 2.0, %v1947_v9  ;;  %v1949_v15 = vpop.eup %1948 }
 0x2dc   :  { %v362_v22 = vmul.f32 %v1949_v15, %v246_v49 }
 0x2dd   :  { %v1826_v14 = vadd.f32 -1.0, %v357_v10 }
 0x2df   :  { %v361_v19 = vsel %vm41_vm1, %v1826_v14, %v1947_v9 }
 0x2e0   :  { %v363_v20 = vmul.f32 %v1949_v15, %v361_v19 }
 0x2e2   :  { %365 = vrot.lane.b32.xlu1 %v363_v20, %s2093_s2 }
 0x354   :  { %v366_v23 = vpop.permute.xlu1 %365 }
 0x355   :  { %v368_v24 = vadd.f32 %v366_v23, %v362_v22 }
 0x357   :  { %1950 = vtanh.f32 %v368_v24 }
 0x364   :  { %v1951_v25 = vpop.eup %1950 }
 0x365   :  { %v2293_v26 = vmul.f32 %v1951_v25, %v361_v19 }
 0x367   :  { %v371_v27 = vpack.c.bf16 %v2293_v26, %v2293_v26 }
 0x369   :  { %373 = vrot.lane.b32.xlu1 %v371_v27, %s2093_s2 }
 0x37b   :  { %v181_v15 = vpop.f32.mrf.mxu0 }
 0x37c   :  { %v182_v30 = vadd.f32 %v181_v15, %v2187_v16 }
 0x37d   :  { %v183_v19 = vpop.f32.mrf.mxu0 }
 0x37f   :  { %v187_v20 = vpop.f32.mrf.mxu0 }
 0x381   :  { %v189_v21 = vpop.f32.mrf.mxu0 }
 0x383   :  { %v2355_v22 = vpop.f32.mrf.mxu0 }
 0x385   :  { %v2357_v23 = vpop.f32.mrf.mxu0 }
 0x3db   :  { %v374_v28 = vpop.permute.xlu1 %373 }
 0x3dc   :  { %1827 = vmatmul.mubr.msk.bf16.vlgmr.msra.gmra.mxu1 %vm293_vm2, %v374_v28 }
 0x3dd   :  { %549 = vmatpush1.bf16.msra.mxu1 %v2215_v40  ;;  %572 = vmatprep.mubr.bf16.mxu1 %v2094_v39 }
 0x3de   :  { %550 = vmatprep.subr.bf16.mxu1 %v2222_v41 }
 0x3e1   :  { %551 = vmatpush1.bf16.msra.mxu1 %v2229_v42 }
 0x3e2   :  { %552 = vmatprep.subr.bf16.mxu1 %v2236_v43 }
 0x3e5   :  { %553 = vmatpush1.bf16.msra.mxu1 %v2243_v44 }
 0x3e6   :  { %554 = vmatprep.subr.bf16.mxu1 %v2250_v45 }
 0x3e9   :  { %555 = vmatpush1.bf16.msra.mxu1 %v2257_v46 }
 0x3ea   :  { %710 = vmatprep.subr.bf16.mxu1 %v2208_v38 }
 0x49c   :  { %v412_v32 = vpop.f32.mrf.mxu1 }
 0x49d   :  { %v419_v35 = vadd.f32 %v412_v32, %v176_v31 }
 0x49e   :  { %v414_v34 = vpop.f32.mrf.mxu1 }
 0x49f   :  { %v420_v36 = vadd.f32 %v414_v34, %v178_v33  ;;  %v1828_v49 = vmul.f32 -1.442695, %v419_v35 }
 0x4a0   :  { %v416_v37 = vpop.f32.mrf.mxu1 }
 0x4a1   :  { %v422_v47 = vmul.f32 2.0, %v420_v36 }
 0x4a2   :  { %v417_v48 = vpop.f32.mrf.mxu1 }
 0x4a3   :  { %v424_v50 = vsel %vm41_vm1, %v422_v47, %v420_v36 }
 0x4a4   :  { %v1829_v52 = vmul.f32 -1.442695, %v424_v50 }
 0x4a6   :  { %1952 = vpow2.f32 %v1829_v52 }
 0x4a7   :  { %1954 = vpow2.f32 %v1828_v49 }
 0x4b3   :  { %v1953_v53 = vpop.eup %1952 }
 0x4b4   :  { %v1955_v54 = vpop.eup %1954  ;;  %v432_v55 = vadd.f32 1.0, %v1953_v53 }
 0x4b5   :  { %v431_v56 = vadd.f32 1.0, %v1955_v54 }
 0x4b6   :  { %1956 = vrcp.f32 %v432_v55 }
 0x4b7   :  { %1958 = vrcp.f32 %v431_v56 }
 0x4c3   :  { %v1957_v57 = vpop.eup %1956 }
 0x4c4   :  { %v438_v58 = vmul.f32 2.0, %v1957_v57  ;;  %v1959_v60 = vpop.eup %1958 }
 0x4c5   :  { %v443_v5 = vmul.f32 %v1959_v60, %v368_v24  ;;  %v2359_v24 = vpop.f32.mrf.mxu0 }
 0x4c6   :  { %v1831_v59 = vadd.f32 -1.0, %v438_v58 }
 0x4c7   :  { %v2361_v25 = vpop.f32.mrf.mxu0 }
 0x4c8   :  { %v442_v61 = vsel %vm41_vm1, %v1831_v59, %v1957_v57 }
 0x4c9   :  { %v444_v62 = vmul.f32 %v1959_v60, %v442_v61  ;;  %v2363_v27 = vpop.f32.mrf.mxu0 }
 0x4cb   :  { %446 = vrot.lane.b32.xlu0 %v444_v62, %s2093_s2  ;;  %v2365_v28 = vpop.f32.mrf.mxu0 }
 0x53d   :  { %v447_v6 = vpop.permute.xlu0 %446 }
 0x53e   :  { %v449_v7 = vadd.f32 %v447_v6, %v443_v5  ;;  %v188_v5 = vadd.f32 %v187_v20, %v2187_v16  ;;  %v190_v6 = vadd.f32 %v189_v21, %v2190_v17 }
 0x540   :  { %1960 = vtanh.f32 %v449_v7 }
 0x54d   :  { %v1961_v8 = vpop.eup %1960 }
 0x54e   :  { %v2340_v9 = vmul.f32 %v1961_v8, %v442_v61 }
 0x550   :  { %v452_v10 = vpack.c.bf16 %v2340_v9, %v2340_v9 }
 0x552   :  { %454 = vrot.lane.b32.xlu1 %v452_v10, %s2093_s2 }
 0x5c4   :  { %v455_v14 = vpop.permute.xlu1 %454 }
 0x5c5   :  { %1832 = vmatmul.mubr.msk.bf16.vlgmr.msra.gmra.mxu0 %vm293_vm2, %v455_v14 }
 0x5c6   :  { %630 = vmatpush1.bf16.msra.mxu0 %v2215_v40  ;;  %653 = vmatprep.mubr.bf16.mxu0 %v2094_v39 }
 0x5c7   :  { %631 = vmatprep.subr.bf16.mxu0 %v2222_v41 }
 0x5ca   :  { %632 = vmatpush1.bf16.msra.mxu0 %v2229_v42 }
 0x5cb   :  { %633 = vmatprep.subr.bf16.mxu0 %v2236_v43 }
 0x5ce   :  { %634 = vmatpush1.bf16.msra.mxu0 %v2243_v44 }
 0x5cf   :  { %635 = vmatprep.subr.bf16.mxu0 %v2250_v45 }
 0x5d2   :  { %636 = vmatpush1.bf16.msra.mxu0 %v2257_v46 }
 0x5d3   :  { %791 = vmatprep.subr.bf16.mxu0 %v2208_v38  ;;  %v184_v38 = vadd.f32 %v183_v19, %v2190_v17 }
 0x685   :  { %v493_v29 = vpop.f32.mrf.mxu0 }
 0x686   :  { %v500_v32 = vadd.f32 %v493_v29, %v182_v30 }
 0x687   :  { %v495_v31 = vpop.f32.mrf.mxu0 }
 0x688   :  { %v501_v33 = vadd.f32 %v495_v31, %v184_v38  ;;  %v1833_v37 = vmul.f32 -1.442695, %v500_v32 }
 0x689   :  { %v497_v34 = vpop.f32.mrf.mxu0 }
 0x68a   :  { %v503_v35 = vmul.f32 2.0, %v501_v33 }
 0x68b   :  { %v498_v36 = vpop.f32.mrf.mxu0 }
 0x68c   :  { %v505_v47 = vsel %vm41_vm1, %v503_v35, %v501_v33 }
 0x68d   :  { %v1834_v48 = vmul.f32 -1.442695, %v505_v47 }
 0x68f   :  { %1962 = vpow2.f32 %v1834_v48 }
 0x690   :  { %1964 = vpow2.f32 %v1833_v37 }
 0x69c   :  { %v1963_v49 = vpop.eup %1962 }
 0x69d   :  { %v1965_v50 = vpop.eup %1964  ;;  %v513_v52 = vadd.f32 1.0, %v1963_v49 }
 0x69e   :  { %v512_v53 = vadd.f32 1.0, %v1965_v50 }
 0x69f   :  { %1966 = vrcp.f32 %v513_v52 }
 0x6a0   :  { %1968 = vrcp.f32 %v512_v53 }
 0x6ac   :  { %v1967_v54 = vpop.eup %1966 }
 0x6ad   :  { %v519_v55 = vmul.f32 2.0, %v1967_v54  ;;  %v1969_v57 = vpop.eup %1968 }
 0x6ae   :  { %v524_v60 = vmul.f32 %v1969_v57, %v449_v7 }
 0x6af   :  { %v1836_v56 = vadd.f32 -1.0, %v519_v55 }
 0x6b1   :  { %v523_v58 = vsel %vm41_vm1, %v1836_v56, %v1967_v54 }
 0x6b2   :  { %v525_v59 = vmul.f32 %v1969_v57, %v523_v58  ;;  %v194_v57 = vadd.f32 %v2355_v22, %v2187_v16 }
 0x6b4   :  { %527 = vrot.lane.b32.xlu0 %v525_v59, %s2093_s2 }
 0x726   :  { %v528_v61 = vpop.permute.xlu0 %527 }
 0x727   :  { %v530_v62 = vadd.f32 %v528_v61, %v524_v60 }
 0x729   :  { %1970 = vtanh.f32 %v530_v62 }
 0x736   :  { %v1971_v63 = vpop.eup %1970 }
 0x737   :  { %v2374_v0 = vmul.f32 %v1971_v63, %v523_v58 }
 0x739   :  { %v533_v1 = vpack.c.bf16 %v2374_v0, %v2374_v0 }
 0x73b   :  { %535 = vrot.lane.b32.xlu1 %v533_v1, %s2093_s2 }
 0x7ad   :  { %v536_v2 = vpop.permute.xlu1 %535 }
 0x7ae   :  { %1837 = vmatmul.mubr.msk.bf16.vlgmr.msra.gmra.mxu1 %vm293_vm2, %v536_v2 }
 0x7af   :  { %711 = vmatpush1.bf16.msra.mxu1 %v2215_v40  ;;  %734 = vmatprep.mubr.bf16.mxu1 %v2094_v39 }
 0x7b0   :  { %712 = vmatprep.subr.bf16.mxu1 %v2222_v41 }
 0x7b3   :  { %713 = vmatpush1.bf16.msra.mxu1 %v2229_v42 }
 0x7b4   :  { %714 = vmatprep.subr.bf16.mxu1 %v2236_v43 }
 0x7b7   :  { %715 = vmatpush1.bf16.msra.mxu1 %v2243_v44 }
 0x7b8   :  { %716 = vmatprep.subr.bf16.mxu1 %v2250_v45 }
 0x7bb   :  { %717 = vmatpush1.bf16.msra.mxu1 %v2257_v46 }
 0x86e   :  { %v574_v4 = vpop.f32.mrf.mxu1 }
 0x86f   :  { %v581_v8 = vadd.f32 %v574_v4, %v188_v5 }
 0x870   :  { %v576_v7 = vpop.f32.mrf.mxu1 }
 0x871   :  { %v582_v10 = vadd.f32 %v576_v7, %v190_v6  ;;  %v1838_v29 = vmul.f32 -1.442695, %v581_v8 }
 0x872   :  { %v578_v14 = vpop.f32.mrf.mxu1 }
 0x873   :  { %v584_v15 = vmul.f32 2.0, %v582_v10 }
 0x874   :  { %v579_v19 = vpop.f32.mrf.mxu1 }
 0x875   :  { %v586_v30 = vsel %vm41_vm1, %v584_v15, %v582_v10 }
 0x876   :  { %v1839_v38 = vmul.f32 -1.442695, %v586_v30 }
 0x878   :  { %1972 = vpow2.f32 %v1839_v38  ;;  %v200_v38 = vadd.f32 %v2359_v24, %v2187_v16 }
 0x879   :  { %1974 = vpow2.f32 %v1838_v29 }
 0x885   :  { %v1973_v31 = vpop.eup %1972 }
 0x886   :  { %v1975_v32 = vpop.eup %1974  ;;  %v594_v33 = vadd.f32 1.0, %v1973_v31  ;;  %v202_v31 = vadd.f32 %v2361_v25, %v2190_v17 }
 0x887   :  { %v593_v20 = vadd.f32 1.0, %v1975_v32 }
 0x888   :  { %1976 = vrcp.f32 %v594_v33 }
 0x889   :  { %1978 = vrcp.f32 %v593_v20 }
 0x895   :  { %v1977_v21 = vpop.eup %1976 }
 0x896   :  { %v600_v34 = vmul.f32 2.0, %v1977_v21  ;;  %v1979_v36 = vpop.eup %1978 }
 0x897   :  { %v605_v48 = vmul.f32 %v1979_v36, %v530_v62 }
 0x898   :  { %v1841_v35 = vadd.f32 -1.0, %v600_v34 }
 0x89a   :  { %v604_v37 = vsel %vm41_vm1, %v1841_v35, %v1977_v21 }
 0x89b   :  { %v606_v47 = vmul.f32 %v1979_v36, %v604_v37 }
 0x89d   :  { %608 = vrot.lane.b32.xlu0 %v606_v47, %s2093_s2 }
 0x90f   :  { %v609_v49 = vpop.permute.xlu0 %608 }
 0x910   :  { %v611_v50 = vadd.f32 %v609_v49, %v605_v48 }
 0x912   :  { %1980 = vtanh.f32 %v611_v50 }
 0x91f   :  { %v1981_v52 = vpop.eup %1980 }
 0x920   :  { %v2395_v53 = vmul.f32 %v1981_v52, %v604_v37 }
 0x922   :  { %v614_v54 = vpack.c.bf16 %v2395_v53, %v2395_v53 }
 0x924   :  { %616 = vrot.lane.b32.xlu1 %v614_v54, %s2093_s2 }
 0x996   :  { %v617_v55 = vpop.permute.xlu1 %616 }
 0x997   :  { %1842 = vmatmul.mubr.msk.bf16.vlgmr.msra.gmra.mxu0 %vm293_vm2, %v617_v55 }
 0x998   :  { %792 = vmatpush1.bf16.msra.mxu0 %v2215_v40  ;;  %815 = vmatprep.mubr.bf16.mxu0 %v2094_v39  ;;  %v196_v40 = vadd.f32 %v2357_v23, %v2190_v17 }
 0x999   :  { %793 = vmatprep.subr.bf16.mxu0 %v2222_v41 }
 0x99c   :  { %794 = vmatpush1.bf16.msra.mxu0 %v2229_v42 }
 0x99d   :  { %795 = vmatprep.subr.bf16.mxu0 %v2236_v43 }
 0x9a0   :  { %796 = vmatpush1.bf16.msra.mxu0 %v2243_v44 }
 0x9a1   :  { %797 = vmatprep.subr.bf16.mxu0 %v2250_v45 }
 0x9a4   :  { %798 = vmatpush1.bf16.msra.mxu0 %v2257_v46 }
 0xa57   :  { %v655_v56 = vpop.f32.mrf.mxu0 }
 0xa58   :  { %v662_v59 = vadd.f32 %v655_v56, %v194_v57 }
 0xa59   :  { %v657_v58 = vpop.f32.mrf.mxu0 }
 0xa5a   :  { %v663_v41 = vadd.f32 %v657_v58, %v196_v40  ;;  %v1843_v43 = vmul.f32 -1.442695, %v662_v59 }
 0xa5b   :  { %v659_v60 = vpop.f32.mrf.mxu0 }
 0xa5c   :  { %v665_v42 = vmul.f32 2.0, %v663_v41 }
 0xa5d   :  { %v660_v61 = vpop.f32.mrf.mxu0 }
 0xa5e   :  { %v667_v44 = vsel %vm41_vm1, %v665_v42, %v663_v41 }
 0xa5f   :  { %v1844_v45 = vmul.f32 -1.442695, %v667_v44  ;;  %v927_v44 = vld [vmem:[%s2854_s4 + $0xf0] sm:$0xff] }
 0xa61   :  { %1982 = vpow2.f32 %v1844_v45  ;;  %v926_v45 = vld [vmem:[%s2854_s4 + $0xe8] sm:$0xff] }
 0xa62   :  { %1984 = vpow2.f32 %v1843_v43  ;;  %v928_v43 = vld [vmem:[%s2854_s4 + $0xf8] sm:$0xff] }
 0xa63   :  { %941 = vmatprep.subr.mxu1 %v928_v43  ;;  %v900_v43 = vld [vmem:[%s2854_s4 + $0x18] sm:$0xff] }
 0xa6e   :  { %v1983_v46 = vpop.eup %1982 }
 0xa6f   :  { %v1985_v62 = vpop.eup %1984  ;;  %v675_v63 = vadd.f32 1.0, %v1983_v46  ;;  %v925_v46 = vld [vmem:[%s2854_s4 + $0xe0] sm:$0xff] }
 0xa70   :  { %v674_v22 = vadd.f32 1.0, %v1985_v62  ;;  %v924_v62 = vld [vmem:[%s2854_s4 + $0xd8] sm:$0xff] }
 0xa71   :  { %1986 = vrcp.f32 %v675_v63  ;;  %v923_v63 = vld [vmem:[%s2854_s4 + $0xd0] sm:$0xff] }
 0xa72   :  { %1988 = vrcp.f32 %v674_v22  ;;  %v922_v22 = vld [vmem:[%s2854_s4 + $0xc8] sm:$0xff] }
 0xa7e   :  { %v1987_v23 = vpop.eup %1986 }
 0xa7f   :  { %v681_v1 = vmul.f32 2.0, %v1987_v23  ;;  %v1989_v4 = vpop.eup %1988 }
 0xa80   :  { %v686_v7 = vmul.f32 %v1989_v4, %v611_v50 }
 0xa81   :  { %v1846_v2 = vadd.f32 -1.0, %v681_v1  ;;  %v920_v1 = vld [vmem:[%s2854_s4 + $0xb8] sm:$0xff] }
 0xa83   :  { %v685_v5 = vsel %vm41_vm1, %v1846_v2, %v1987_v23  ;;  %v921_v23 = vld [vmem:[%s2854_s4 + $0xc0] sm:$0xff]  ;;  %v919_v2 = vld [vmem:[%s2854_s4 + $0xb0] sm:$0xff] }
 0xa84   :  { %v687_v6 = vmul.f32 %v1989_v4, %v685_v5  ;;  %v918_v4 = vld [vmem:[%s2854_s4 + $0xa8] sm:$0xff] }
 0xa86   :  { %689 = vrot.lane.b32.xlu0 %v687_v6, %s2093_s2  ;;  %v916_v6 = vld [vmem:[%s2854_s4 + $0x98] sm:$0xff] }
 0xaf8   :  { %v690_v8 = vpop.permute.xlu0 %689 }
 0xaf9   :  { %v692_v10 = vadd.f32 %v690_v8, %v686_v7  ;;  %v206_v8 = vadd.f32 %v2363_v27, %v2187_v16  ;;  %v914_v27 = vld [vmem:[%s2854_s4 + $0x88] sm:$0xff] }
 0xafb   :  { %1990 = vtanh.f32 %v692_v10 }
 0xb08   :  { %v1991_v14 = vpop.eup %1990 }
 0xb09   :  { %v2418_v15 = vmul.f32 %v1991_v14, %v685_v5  ;;  %v917_v5 = vld [vmem:[%s2854_s4 + $0xa0] sm:$0xff] }
 0xb0b   :  { %v695_v19 = vpack.c.bf16 %v2418_v15, %v2418_v15 }
 0xb0d   :  { %697 = vrot.lane.b32.xlu1 %v695_v19, %s2093_s2 }
 0xb7f   :  { %v698_v29 = vpop.permute.xlu1 %697 }
 0xb80   :  { %1847 = vmatmul.mubr.msk.bf16.vlgmr.msra.gmra.mxu1 %vm293_vm2, %v698_v29 }
 0xb81   :  { %1005 = vmatprep.mubr.f32.mxu1 %v2092_v3  ;;  %942 = vmatpush1.msra.mxu1 %v927_v44  ;;  %v899_v44 = vld [vmem:[%s2854_s4 + $0x10] sm:$0xff] }
 0xb82   :  { %943 = vmatprep.subr.mxu1 %v926_v45  ;;  %v898_v45 = vld [vmem:[%s2854_s4 + $0x8] sm:$0xff] }
 0xb83   :  { %944 = vmatpush1.msra.mxu1 %v925_v46  ;;  %v897_v46 = vld [vmem:[%s2854_s4] sm:$0xff] }
 0xb84   :  { %945 = vmatprep.subr.mxu1 %v924_v62 }
 0xb85   :  { %946 = vmatpush1.msra.mxu1 %v923_v63 }
 0xb86   :  { %947 = vmatprep.subr.mxu1 %v922_v22 }
 0xb87   :  { %948 = vmatpush1.msra.mxu1 %v921_v23 }
 0xb88   :  { %949 = vmatprep.subr.mxu1 %v920_v1 }
 0xb89   :  { %950 = vmatpush1.msra.mxu1 %v919_v2 }
 0xb8a   :  { %951 = vmatprep.subr.mxu1 %v918_v4 }
 0xb8b   :  { %952 = vmatpush1.msra.mxu1 %v917_v5 }
 0xb8c   :  { %953 = vmatprep.subr.mxu1 %v916_v6 }
 0xc40   :  { %v736_v30 = vpop.f32.mrf.mxu1 }
 0xc41   :  { %v743_v33 = vadd.f32 %v736_v30, %v200_v38 }
 0xc42   :  { %v738_v32 = vpop.f32.mrf.mxu1 }
 0xc43   :  { %v744_v20 = vadd.f32 %v738_v32, %v202_v31  ;;  %v1848_v36 = vmul.f32 -1.442695, %v743_v33 }
 0xc44   :  { %v740_v21 = vpop.f32.mrf.mxu1 }
 0xc45   :  { %v746_v34 = vmul.f32 2.0, %v744_v20 }
 0xc46   :  { %v741_v35 = vpop.f32.mrf.mxu1 }
 0xc47   :  { %v748_v37 = vsel %vm41_vm1, %v746_v34, %v744_v20 }
 0xc48   :  { %v1849_v47 = vmul.f32 -1.442695, %v748_v37  ;;  %v911_v37 = vld [vmem:[%s2854_s4 + $0x70] sm:$0xff] }
 0xc4a   :  { %1992 = vpow2.f32 %v1849_v47  ;;  %v910_v47 = vld [vmem:[%s2854_s4 + $0x68] sm:$0xff] }
 0xc4b   :  { %1994 = vpow2.f32 %v1848_v36  ;;  %v912_v36 = vld [vmem:[%s2854_s4 + $0x78] sm:$0xff] }
 0xc57   :  { %v1993_v48 = vpop.eup %1992 }
 0xc58   :  { %v1995_v49 = vpop.eup %1994  ;;  %v756_v50 = vadd.f32 1.0, %v1993_v48  ;;  %v909_v48 = vld [vmem:[%s2854_s4 + $0x60] sm:$0xff] }
 0xc59   :  { %v755_v24 = vadd.f32 1.0, %v1995_v49  ;;  %v908_v49 = vld [vmem:[%s2854_s4 + $0x58] sm:$0xff] }
 0xc5a   :  { %1996 = vrcp.f32 %v756_v50 }
 0xc5b   :  { %1998 = vrcp.f32 %v755_v24  ;;  %v907_v24 = vld [vmem:[%s2854_s4 + $0x50] sm:$0xff] }
 0xc67   :  { %v1997_v25 = vpop.eup %1996 }
 0xc68   :  { %v762_v52 = vmul.f32 2.0, %v1997_v25  ;;  %v1999_v55 = vpop.eup %1998 }
 0xc69   :  { %v767_v40 = vmul.f32 %v1999_v55, %v692_v10  ;;  %v208_v10 = vadd.f32 %v2365_v28, %v2190_v17  ;;  %v915_v17 = vld [vmem:[%s2854_s4 + $0x90] sm:$0xff]  ;;  %v913_v28 = vld [vmem:[%s2854_s4 + $0x80] sm:$0xff] }
 0xc6a   :  { %v1851_v54 = vadd.f32 -1.0, %v762_v52  ;;  %954 = vmatpush1.msra.mxu1 %v915_v17  ;;  %v906_v52 = vld [vmem:[%s2854_s4 + $0x48] sm:$0xff] }
 0xc6b   :  { %955 = vmatprep.subr.mxu1 %v914_v27 }
 0xc6c   :  { %v766_v56 = vsel %vm41_vm1, %v1851_v54, %v1997_v25  ;;  %956 = vmatpush1.msra.mxu1 %v913_v28  ;;  %v905_v54 = vld [vmem:[%s2854_s4 + $0x40] sm:$0xff] }
 0xc6d   :  { %v768_v57 = vmul.f32 %v1999_v55, %v766_v56  ;;  %957 = vmatprep.subr.mxu1 %v912_v36 }
 0xc6e   :  { %958 = vmatpush1.msra.mxu1 %v911_v37  ;;  %v2581_v37 = vld [vmem:[%s2856_s6 + $0x34] ss:$8 sps:$4 sm:$0xff]  }
 0xc6f   :  { %770 = vrot.lane.b32.xlu0 %v768_v57, %s2093_s2  ;;  %959 = vmatprep.subr.mxu1 %v910_v47  ;;  %v903_v57 = vld [vmem:[%s2854_s4 + $0x30] sm:$0xff] }
 0xc70   :  { %960 = vmatpush1.msra.mxu1 %v909_v48  ;;  %v2586_v47 = vld [vmem:[%s2856_s6 + $0x30] ss:$8 sps:$4 sm:$0xff]   ;;  %1148 = vmatprep.subr.bf16.mxu0 %v2581_v37  ;;  %v2592_v48 = vld [vmem:[%s2856_s6 + $0x24] ss:$8 sps:$4 sm:$0xff]  }
 0xc71   :  { %961 = vmatprep.subr.mxu1 %v908_v49  ;;  %v2599_v49 = vld [vmem:[%s2856_s6 + $0x20] ss:$8 sps:$4 sm:$0xff]  }
 0xc72   :  { %962 = vmatpush1.msra.mxu1 %v907_v24  ;;  %v2613_v24 = vld [vmem:[%s2856_s6 + $0x10] ss:$8 sps:$4 sm:$0xff]  }
 0xc73   :  { %963 = vmatprep.subr.mxu1 %v906_v52  ;;  %v2627_v52 = vld [vmem:[%s2856_s6] ss:$8 sps:$4 sm:$0xff]  }
 0xc74   :  { %964 = vmatpush1.msra.mxu1 %v905_v54 }
 0xce1   :  { %v771_v58 = vpop.permute.xlu0 %770 }
 0xce2   :  { %v2434_v59 = vadd.f32 %v771_v58, %v767_v40 }
 0xce4   :  { %2000 = vtanh.f32 %v2434_v59 }
 0xcf1   :  { %v2001_v41 = vpop.eup %2000 }
 0xcf2   :  { %v2437_v60 = vmul.f32 %v2001_v41, %v766_v56  ;;  %v904_v56 = vld [vmem:[%s2854_s4 + $0x38] sm:$0xff]  ;;  %v902_v41 = vld [vmem:[%s2854_s4 + $0x28] sm:$0xff] }
 0xcf3   :  { %965 = vmatprep.subr.mxu1 %v904_v56 }
 0xcf4   :  { %v776_v42 = vpack.c.bf16 %v2437_v60, %v2437_v60  ;;  %966 = vmatpush1.msra.mxu1 %v903_v57 }
 0xcf5   :  { %967 = vmatprep.subr.mxu1 %v902_v41 }
 0xcf6   :  { %778 = vrot.lane.b32.xlu1 %v776_v42, %s2093_s2 }
 0xcfa   :  { %858 = vrot.lane.b32.xlu1 %v2266_v51, %s2093_s2 }
 0xcfe   :  { %863 = vrot.lane.b32.xlu1 %v2293_v26, %s2093_s2 }
 0xd68   :  { %v779_v61 = vpop.permute.xlu1 %778 }
 0xd69   :  { %1852 = vmatmul.mubr.msk.bf16.vlgmr.msra.gmra.mxu0 %vm293_vm2, %v779_v61  ;;  %v901_v61 = vld [vmem:[%s2854_s4 + $0x20] sm:$0xff] }
 0xd6a   :  { %1172 = vmatprep.mubr.bf16.mxu0 %v2094_v39  ;;  %968 = vmatpush1.msra.mxu1 %v901_v61 }
 0xd6b   :  { %969 = vmatprep.subr.mxu1 %v900_v43  ;;  %1149 = vmatpush1.bf16.msra.mxu0 %v2586_v47 }
 0xd6c   :  { %970 = vmatpush1.msra.mxu1 %v899_v44  ;;  %v859_v23 = vpop.permute.xlu1 %858  ;;  %1150 = vmatprep.subr.bf16.mxu0 %v2592_v48 }
 0xd6d   :  { %971 = vmatprep.subr.mxu1 %v898_v45 }
 0xd6e   :  { %972 = vmatpush1.msra.mxu1 %v897_v46 }
 0xd6f   :  { %1391 = vmatprep.subr.bf16.mxu1 %v2581_v37  ;;  %1151 = vmatpush1.bf16.msra.mxu0 %v2599_v49 }
 0xd70   :  { %v864_v5 = vpop.permute.xlu1 %863 }
 0xd71   :  { %v866_v6 = vsel %vm293_vm2, %v864_v5, %v2437_v60 }
 0xe29   :  { %v817_v7 = vpop.f32.mrf.mxu0 }
 0xe2a   :  { %v824_v19 = vadd.f32 %v817_v7, %v206_v8 }
 0xe2b   :  { %v819_v14 = vpop.f32.mrf.mxu0 }
 0xe2c   :  { %v825_v29 = vadd.f32 %v819_v14, %v208_v10  ;;  %v1853_v32 = vmul.f32 -1.442695, %v824_v19 }
 0xe2d   :  { %v821_v30 = vpop.f32.mrf.mxu0 }
 0xe2e   :  { %v827_v38 = vmul.f32 2.0, %v825_v29 }
 0xe2f   :  { %v822_v31 = vpop.f32.mrf.mxu0 }
 0xe30   :  { %v829_v33 = vsel %vm41_vm1, %v827_v38, %v825_v29 }
 0xe31   :  { %v1854_v20 = vmul.f32 -1.442695, %v829_v33 }
 0xe33   :  { %2002 = vpow2.f32 %v1854_v20 }
 0xe34   :  { %2004 = vpow2.f32 %v1853_v32 }
 0xe40   :  { %v2003_v21 = vpop.eup %2002 }
 0xe41   :  { %v2005_v34 = vpop.eup %2004  ;;  %v837_v35 = vadd.f32 1.0, %v2003_v21 }
 0xe42   :  { %v836_v16 = vadd.f32 1.0, %v2005_v34 }
 0xe43   :  { %2006 = vrcp.f32 %v837_v35 }
 0xe44   :  { %2008 = vrcp.f32 %v836_v16 }
 0xe50   :  { %v2007_v50 = vpop.eup %2006 }
 0xe51   :  { %v843_v25 = vmul.f32 2.0, %v2007_v50  ;;  %v2009_v40 = vpop.eup %2008 }
 0xe52   :  { %v848_v62 = vmul.f32 %v2009_v40, %v2434_v59  ;;  %v929_v59 = vld [vmem:[%s2855_s5] sm:$0x3] }
 0xe53   :  { %v1856_v55 = vadd.f32 -1.0, %v843_v25  ;;  %v2566_v7 = vrot.slane %v929_v59, %v2178_v12  ;;  %v2569_v8 = vrot.slane %v929_v59, %v2181_v13  ;;  %v2620_v25 = vld [vmem:[%s2856_s6 + $0x4] ss:$8 sps:$4 sm:$0xff]  }
 0xe55   :  { %v847_v58 = vsel %vm41_vm1, %v1856_v55, %v2007_v50  ;;  %v2606_v50 = vld [vmem:[%s2856_s6 + $0x14] ss:$8 sps:$4 sm:$0xff]  }
 0xe56   :  { %v849_v42 = vmul.f32 %v2009_v40, %v847_v58  ;;  %1152 = vmatprep.subr.bf16.mxu0 %v2606_v50 }
 0xe57   :  { %1153 = vmatpush1.bf16.msra.mxu0 %v2613_v24 }
 0xe58   :  { %851 = vrot.lane.b32.xlu0 %v849_v42, %s2093_s2  ;;  %1154 = vmatprep.subr.bf16.mxu0 %v2620_v25 }
 0xe5b   :  { %1155 = vmatpush1.bf16.msra.mxu0 %v2627_v52 }
 0xe5c   :  { %1229 = vmatprep.subr.bf16.mxu0 %v2581_v37 }
 0xeca   :  { %v852_v63 = vpop.permute.xlu0 %851 }
 0xecb   :  { %v854_v22 = vadd.f32 %v852_v63, %v848_v62 }
 0xecd   :  { %2010 = vtanh.f32 %v854_v22 }
 0xeda   :  { %v2011_v1 = vpop.eup %2010 }
 0xedb   :  { %v2554_v2 = vmul.f32 %v2011_v1, %v847_v58 }
 0xedd   :  { %v861_v4 = vsel %vm293_vm2, %v859_v23, %v2554_v2 }
 0xede   :  { %1006 = vmatmul.mubr.f32.vlgmr.msra.gmra.mxu1 %v861_v4 }
 0xedf   :  { %1011 = vmatprep.mubr.f32.mxu1 %v2092_v3  ;;  %1392 = vmatpush1.bf16.msra.mxu1 %v2586_v47 }
 0xee0   :  { %1393 = vmatprep.subr.bf16.mxu1 %v2592_v48 }
 0xee2   :  { %1012 = vmatmul.mubr.f32.gmra.mxu1 %v866_v6 }
 0xee3   :  { %1017 = vmatprep.mubr.f32.mxu1 %v2092_v3  ;;  %1394 = vmatpush1.bf16.msra.mxu1 %v2599_v49 }
 0xee4   :  { %1395 = vmatprep.subr.bf16.mxu1 %v2606_v50 }
 0xee7   :  { %1396 = vmatpush1.bf16.msra.mxu1 %v2613_v24 }
 0xee8   :  { %1397 = vmatprep.subr.bf16.mxu1 %v2620_v25 }
 0xeeb   :  { %1398 = vmatpush1.bf16.msra.mxu1 %v2627_v52 }
 0xeec   :  { %1553 = vmatprep.subr.bf16.mxu1 %v2581_v37 }
 0xf9e   :  { %v1007_v10 = vpop.f32.mrf.mxu1 }
 0xf9f   :  { %v1008_v19 = vadd.f32 %v1007_v10, %v2566_v7 }
 0xfa0   :  { %v1009_v14 = vpop.f32.mrf.mxu1 }
 0xfa1   :  { %v1010_v29 = vadd.f32 %v1009_v14, %v2569_v8  ;;  %v1857_v38 = vmul.f32 -1.442695, %v1008_v19 }
 0xfa2   :  { %v1013_v43 = vpop.f32.mrf.mxu1 }
 0xfa3   :  { %v1063_v30 = vmul.f32 2.0, %v1010_v29  ;;  %v1014_v46 = vadd.f32 %v1013_v43, %v2566_v7 }
 0xfa4   :  { %v1015_v44 = vpop.f32.mrf.mxu1 }
 0xfa5   :  { %v1065_v31 = vsel %vm41_vm1, %v1063_v30, %v1010_v29  ;;  %v1016_v62 = vadd.f32 %v1015_v44, %v2569_v8 }
 0xfa6   :  { %v1858_v32 = vmul.f32 -1.442695, %v1065_v31 }
 0xfa8   :  { %2012 = vpow2.f32 %v1858_v32 }
 0xfa9   :  { %2014 = vpow2.f32 %v1857_v38 }
 0xfb5   :  { %v2013_v33 = vpop.eup %2012 }
 0xfb6   :  { %v2015_v20 = vpop.eup %2014  ;;  %v1073_v21 = vadd.f32 1.0, %v2013_v33 }
 0xfb7   :  { %v1072_v34 = vadd.f32 1.0, %v2015_v20 }
 0xfb8   :  { %2016 = vrcp.f32 %v1073_v21 }
 0xfb9   :  { %2018 = vrcp.f32 %v1072_v34 }
 0xfc5   :  { %v2017_v35 = vpop.eup %2016 }
 0xfc6   :  { %v1079_v16 = vmul.f32 2.0, %v2017_v35  ;;  %v2019_v27 = vpop.eup %2018 }
 0xfc7   :  { %v1084_v54 = vmul.f32 0.0, %v2019_v27 }
 0xfc8   :  { %v1860_v17 = vadd.f32 -1.0, %v1079_v16 }
 0xfca   :  { %v1083_v28 = vsel %vm41_vm1, %v1860_v17, %v2017_v35 }
 0xfcb   :  { %v1085_v36 = vmul.f32 %v2019_v27, %v1083_v28 }
 0xfcd   :  { %1087 = vrot.lane.b32.xlu0 %v1085_v36, %s2093_s2 }
0x103f   :  { %v1088_v55 = vpop.permute.xlu0 %1087 }
0x1040   :  { %v1090_v56 = vadd.f32 %v1088_v55, %v1084_v54 }
0x1042   :  { %2020 = vtanh.f32 %v1090_v56 }
0x104f   :  { %v2021_v57 = vpop.eup %2020 }
0x1050   :  { %v2636_v40 = vmul.f32 %v2021_v57, %v1083_v28 }
0x1052   :  { %v1093_v58 = vpack.c.bf16 %v2636_v40, %v2636_v40 }
0x1054   :  { %1095 = vrot.lane.b32.xlu0 %v1093_v58, %s2093_s2 }
0x1058   :  { %868 = vrot.lane.b32.xlu0 %v2340_v9, %s2093_s2 }
0x10c6   :  { %v1096_v41 = vpop.permute.xlu0 %1095 }
0x10c7   :  { %1869 = vmatmul.mubr.msk.bf16.vlgmr.msra.gmra.mxu0 %vm293_vm2, %v1096_v41 }
0x10c8   :  { %1230 = vmatpush1.bf16.msra.mxu0 %v2586_v47  ;;  %1253 = vmatprep.mubr.bf16.mxu0 %v2094_v39 }
0x10c9   :  { %1231 = vmatprep.subr.bf16.mxu0 %v2592_v48 }
0x10ca   :  { %v869_v42 = vpop.permute.xlu0 %868 }
0x10cb   :  { %v871_v61 = vsel %vm293_vm2, %v869_v42, %v2418_v15 }
0x10cc   :  { %1018 = vmatmul.mubr.f32.gmra.mxu1 %v871_v61  ;;  %1232 = vmatpush1.bf16.msra.mxu0 %v2599_v49 }
0x10cd   :  { %1233 = vmatprep.subr.bf16.mxu0 %v2606_v50  ;;  %1023 = vmatprep.mubr.f32.mxu1 %v2092_v3 }
0x10d0   :  { %1234 = vmatpush1.bf16.msra.mxu0 %v2613_v24 }
0x10d1   :  { %1235 = vmatprep.subr.bf16.mxu0 %v2620_v25 }
0x10d4   :  { %1236 = vmatpush1.bf16.msra.mxu0 %v2627_v52 }
0x10d5   :  { %1310 = vmatprep.subr.bf16.mxu0 %v2581_v37 }
0x1187   :  { %v1174_v45 = vpop.f32.mrf.mxu0 }
0x1188   :  { %v1181_v22 = vadd.f32 %v1174_v45, %v1014_v46 }
0x1189   :  { %v1176_v63 = vpop.f32.mrf.mxu0 }
0x118a   :  { %v1182_v23 = vadd.f32 %v1176_v63, %v1016_v62  ;;  %v1870_v6 = vmul.f32 -1.442695, %v1181_v22 }
0x118b   :  { %v1178_v1 = vpop.f32.mrf.mxu0 }
0x118c   :  { %v1184_v4 = vmul.f32 2.0, %v1182_v23 }
0x118d   :  { %v1179_v5 = vpop.f32.mrf.mxu0 }
0x118e   :  { %v1186_v59 = vsel %vm41_vm1, %v1184_v4, %v1182_v23 }
0x118f   :  { %v1871_v10 = vmul.f32 -1.442695, %v1186_v59 }
0x1191   :  { %2022 = vpow2.f32 %v1871_v10 }
0x1192   :  { %2024 = vpow2.f32 %v1870_v6 }
0x119e   :  { %v2023_v14 = vpop.eup %2022 }
0x119f   :  { %v2025_v19 = vpop.eup %2024  ;;  %v1194_v29 = vadd.f32 1.0, %v2023_v14 }
0x11a0   :  { %v1193_v30 = vadd.f32 1.0, %v2025_v19 }
0x11a1   :  { %2026 = vrcp.f32 %v1194_v29 }
0x11a2   :  { %2028 = vrcp.f32 %v1193_v30 }
0x11ae   :  { %v2027_v38 = vpop.eup %2026 }
0x11af   :  { %v1200_v31 = vmul.f32 2.0, %v2027_v38  ;;  %v2029_v33 = vpop.eup %2028 }
0x11b0   :  { %v1205_v34 = vmul.f32 %v2029_v33, %v1090_v56  ;;  %v1019_v56 = vpop.f32.mrf.mxu1 }
0x11b1   :  { %v1873_v32 = vadd.f32 -1.0, %v1200_v31  ;;  %v1020_v41 = vadd.f32 %v1019_v56, %v2566_v7 }
0x11b2   :  { %v1021_v57 = vpop.f32.mrf.mxu1 }
0x11b3   :  { %v1204_v20 = vsel %vm41_vm1, %v1873_v32, %v2027_v38  ;;  %v1022_v42 = vadd.f32 %v1021_v57, %v2569_v8 }
0x11b4   :  { %v1206_v21 = vmul.f32 %v2029_v33, %v1204_v20 }
0x11b6   :  { %1208 = vrot.lane.b32.xlu1 %v1206_v21, %s2093_s2 }
0x1228   :  { %v1209_v35 = vpop.permute.xlu1 %1208 }
0x1229   :  { %v1211_v16 = vadd.f32 %v1209_v35, %v1205_v34 }
0x122b   :  { %2030 = vtanh.f32 %v1211_v16 }
0x1238   :  { %v2031_v17 = vpop.eup %2030 }
0x1239   :  { %v2663_v27 = vmul.f32 %v2031_v17, %v1204_v20 }
0x123b   :  { %v1214_v28 = vpack.c.bf16 %v2663_v27, %v2663_v27 }
0x123d   :  { %1216 = vrot.lane.b32.xlu1 %v1214_v28, %s2093_s2 }
0x1241   :  { %873 = vrot.lane.b32.xlu1 %v2374_v0, %s2093_s2 }
0x12af   :  { %v1217_v36 = vpop.permute.xlu1 %1216 }
0x12b0   :  { %1874 = vmatmul.mubr.msk.bf16.vlgmr.msra.gmra.mxu0 %vm293_vm2, %v1217_v36 }
0x12b1   :  { %1311 = vmatpush1.bf16.msra.mxu0 %v2586_v47  ;;  %1334 = vmatprep.mubr.bf16.mxu0 %v2094_v39 }
0x12b2   :  { %1312 = vmatprep.subr.bf16.mxu0 %v2592_v48 }
0x12b3   :  { %v874_v54 = vpop.permute.xlu1 %873 }
0x12b4   :  { %v876_v55 = vsel %vm293_vm2, %v874_v54, %v2395_v53 }
0x12b5   :  { %1024 = vmatmul.mubr.f32.gmra.mxu1 %v876_v55  ;;  %1313 = vmatpush1.bf16.msra.mxu0 %v2599_v49 }
0x12b6   :  { %1314 = vmatprep.subr.bf16.mxu0 %v2606_v50  ;;  %1029 = vmatprep.mubr.f32.mxu1 %v2092_v3 }
0x12b9   :  { %1315 = vmatpush1.bf16.msra.mxu0 %v2613_v24 }
0x12ba   :  { %1316 = vmatprep.subr.bf16.mxu0 %v2620_v25 }
0x12bd   :  { %1317 = vmatpush1.bf16.msra.mxu0 %v2627_v52 }
0x12be   :  { %1472 = vmatprep.subr.bf16.mxu0 %v2581_v37 }
0x1370   :  { %v1255_v58 = vpop.f32.mrf.mxu0 }
0x1371   :  { %v1262_v43 = vadd.f32 %v1255_v58, %v1020_v41 }
0x1372   :  { %v1257_v61 = vpop.f32.mrf.mxu0 }
0x1373   :  { %v1263_v44 = vadd.f32 %v1257_v61, %v1022_v42  ;;  %v1875_v63 = vmul.f32 -1.442695, %v1262_v43 }
0x1374   :  { %v1259_v45 = vpop.f32.mrf.mxu0 }
0x1375   :  { %v1265_v46 = vmul.f32 2.0, %v1263_v44 }
0x1376   :  { %v1260_v62 = vpop.f32.mrf.mxu0 }
0x1377   :  { %v1267_v22 = vsel %vm41_vm1, %v1265_v46, %v1263_v44 }
0x1378   :  { %v1876_v23 = vmul.f32 -1.442695, %v1267_v22 }
0x137a   :  { %2032 = vpow2.f32 %v1876_v23 }
0x137b   :  { %2034 = vpow2.f32 %v1875_v63 }
0x1387   :  { %v2033_v1 = vpop.eup %2032 }
0x1388   :  { %v2035_v4 = vpop.eup %2034  ;;  %v1275_v5 = vadd.f32 1.0, %v2033_v1 }
0x1389   :  { %v1274_v6 = vadd.f32 1.0, %v2035_v4 }
0x138a   :  { %2036 = vrcp.f32 %v1275_v5 }
0x138b   :  { %2038 = vrcp.f32 %v1274_v6 }
0x1397   :  { %v2037_v59 = vpop.eup %2036 }
0x1398   :  { %v1281_v10 = vmul.f32 2.0, %v2037_v59  ;;  %v2039_v19 = vpop.eup %2038 }
0x1399   :  { %v1286_v38 = vmul.f32 %v2039_v19, %v1211_v16 }
0x139a   :  { %v1878_v14 = vadd.f32 -1.0, %v1281_v10 }
0x139c   :  { %v1285_v29 = vsel %vm41_vm1, %v1878_v14, %v2037_v59 }
0x139d   :  { %v1287_v30 = vmul.f32 %v2039_v19, %v1285_v29 }
0x139f   :  { %1289 = vrot.lane.b32.xlu0 %v1287_v30, %s2093_s2 }
0x1411   :  { %v1290_v31 = vpop.permute.xlu0 %1289 }
0x1412   :  { %v1292_v32 = vadd.f32 %v1290_v31, %v1286_v38 }
0x1414   :  { %2040 = vtanh.f32 %v1292_v32 }
0x1421   :  { %v2041_v33 = vpop.eup %2040 }
0x1422   :  { %v2690_v20 = vmul.f32 %v2041_v33, %v1285_v29 }
0x1424   :  { %v1295_v21 = vpack.c.bf16 %v2690_v20, %v2690_v20 }
0x1426   :  { %1297 = vrot.lane.b32.xlu0 %v1295_v21, %s2093_s2 }
0x142a   :  { %878 = vrot.lane.b32.xlu0 %v2395_v53, %s2093_s2  ;;  %v1025_v53 = vpop.f32.mrf.mxu1 }
0x142e   :  { %888 = vrot.lane.b32.xlu0 %v2437_v60, %s2093_s2  ;;  %v1027_v60 = vpop.f32.mrf.mxu1 }
0x142f   :  { %v1028_v28 = vadd.f32 %v1027_v60, %v2569_v8 }
0x1498   :  { %v1298_v34 = vpop.permute.xlu0 %1297 }
0x1499   :  { %1879 = vmatmul.mubr.msk.bf16.vlgmr.msra.gmra.mxu0 %vm293_vm2, %v1298_v34 }
0x149a   :  { %1473 = vmatpush1.bf16.msra.mxu0 %v2586_v47  ;;  %1496 = vmatprep.mubr.bf16.mxu0 %v2094_v39 }
0x149b   :  { %1474 = vmatprep.subr.bf16.mxu0 %v2592_v48 }
0x149c   :  { %v879_v35 = vpop.permute.xlu0 %878 }
0x149d   :  { %v881_v16 = vsel %vm293_vm2, %v879_v35, %v2374_v0  ;;  %v1026_v0 = vadd.f32 %v1025_v53, %v2566_v7 }
0x149e   :  { %1030 = vmatmul.mubr.f32.gmra.mxu1 %v881_v16  ;;  %1475 = vmatpush1.bf16.msra.mxu0 %v2599_v49 }
0x149f   :  { %1035 = vmatprep.mubr.f32.mxu1 %v2092_v3  ;;  %1476 = vmatprep.subr.bf16.mxu0 %v2606_v50 }
0x14a0   :  { %v889_v14 = vpop.permute.xlu0 %888 }
0x14a2   :  { %1477 = vmatpush1.bf16.msra.mxu0 %v2613_v24 }
0x14a3   :  { %1478 = vmatprep.subr.bf16.mxu0 %v2620_v25 }
0x14a6   :  { %1479 = vmatpush1.bf16.msra.mxu0 %v2627_v52 }
0x14a7   :  { %1634 = vmatprep.subr.bf16.mxu0 %v2581_v37 }
0x1559   :  { %v1336_v17 = vpop.f32.mrf.mxu0 }
0x155a   :  { %v1343_v54 = vadd.f32 %v1336_v17, %v1026_v0 }
0x155b   :  { %v1338_v36 = vpop.f32.mrf.mxu0 }
0x155c   :  { %v1344_v55 = vadd.f32 %v1338_v36, %v1028_v28  ;;  %v1880_v41 = vmul.f32 -1.442695, %v1343_v54 }
0x155d   :  { %v1340_v56 = vpop.f32.mrf.mxu0 }
0x155e   :  { %v1346_v57 = vmul.f32 2.0, %v1344_v55 }
0x155f   :  { %v1341_v58 = vpop.f32.mrf.mxu0 }
0x1560   :  { %v1348_v42 = vsel %vm41_vm1, %v1346_v57, %v1344_v55 }
0x1561   :  { %v1881_v61 = vmul.f32 -1.442695, %v1348_v42 }
0x1563   :  { %2042 = vpow2.f32 %v1881_v61 }
0x1564   :  { %2044 = vpow2.f32 %v1880_v41 }
0x1570   :  { %v2043_v37 = vpop.eup %2042 }
0x1571   :  { %v2045_v43 = vpop.eup %2044  ;;  %v1356_v44 = vadd.f32 1.0, %v2043_v37 }
0x1572   :  { %v1355_v45 = vadd.f32 1.0, %v2045_v43 }
0x1573   :  { %2046 = vrcp.f32 %v1356_v44 }
0x1574   :  { %2048 = vrcp.f32 %v1355_v45 }
0x1580   :  { %v2047_v46 = vpop.eup %2046 }
0x1581   :  { %v1362_v62 = vmul.f32 2.0, %v2047_v46  ;;  %v2049_v22 = vpop.eup %2048 }
0x1582   :  { %v1367_v4 = vmul.f32 %v2049_v22, %v1292_v32 }
0x1583   :  { %v1883_v63 = vadd.f32 -1.0, %v1362_v62 }
0x1585   :  { %v1366_v23 = vsel %vm41_vm1, %v1883_v63, %v2047_v46 }
0x1586   :  { %v1368_v1 = vmul.f32 %v2049_v22, %v1366_v23 }
0x1588   :  { %1370 = vrot.lane.b32.xlu1 %v1368_v1, %s2093_s2 }
0x158c   :  { %883 = vrot.lane.b32.xlu1 %v2418_v15, %s2093_s2  ;;  %v891_v15 = vsel %vm293_vm2, %v889_v14, %v2293_v26 }
0x1590   :  { %893 = vrot.lane.b32.xlu1 %v2554_v2, %s2093_s2 }
0x15fa   :  { %v1371_v5 = vpop.permute.xlu1 %1370 }
0x15fb   :  { %v2723_v6 = vadd.f32 %v1371_v5, %v1367_v4 }
0x15fd   :  { %2050 = vtanh.f32 %v2723_v6 }
0x15fe   :  { %v884_v59 = vpop.permute.xlu1 %883 }
0x15ff   :  { %v886_v10 = vsel %vm293_vm2, %v884_v59, %v2340_v9 }
0x1600   :  { %1036 = vmatmul.mubr.f32.gmra.mxu1 %v886_v10 }
0x1601   :  { %1041 = vmatprep.mubr.f32.mxu1 %v2092_v3 }
0x1602   :  { %v894_v19 = vpop.permute.xlu1 %893 }
0x1603   :  { %v896_v2 = vsel %vm293_vm2, %v894_v19, %v2266_v51 }
0x1604   :  { %1042 = vmatmul.mubr.f32.gmra.mxu1 %v891_v15 }
0x1605   :  { %1047 = vmatprep.mubr.f32.mxu1 %v2092_v3  ;;  %v1031_v3 = vpop.f32.mrf.mxu1 }
0x1606   :  { %v1032_v16 = vadd.f32 %v1031_v3, %v2566_v7 }
0x1607   :  { %v1033_v51 = vpop.f32.mrf.mxu1 }
0x1608   :  { %1048 = vmatmul.mubr.f32.gmra.mxu1 %v896_v2  ;;  %v1034_v53 = vadd.f32 %v1033_v51, %v2569_v8 }
0x1609   :  { %1415 = vmatprep.mubr.bf16.mxu1 %v2094_v39 }
0x160a   :  { %v2051_v29 = vpop.eup %2050 }
0x160b   :  { %v2735_v30 = vmul.f32 %v2051_v29, %v1366_v23 }
0x160d   :  { %v1376_v9 = vpack.c.bf16 %v2735_v30, %v2735_v30 }
0x160f   :  { %1378 = vrot.lane.b32.xlu0 %v1376_v9, %s2093_s2 }
0x1681   :  { %v1379_v38 = vpop.permute.xlu0 %1378 }
0x1682   :  { %1884 = vmatmul.mubr.msk.bf16.vlgmr.msra.gmra.mxu1 %vm293_vm2, %v1379_v38 }
0x1683   :  { %1554 = vmatpush1.bf16.msra.mxu1 %v2586_v47  ;;  %1577 = vmatprep.mubr.bf16.mxu1 %v2094_v39 }
0x1684   :  { %1555 = vmatprep.subr.bf16.mxu1 %v2592_v48 }
0x1687   :  { %1556 = vmatpush1.bf16.msra.mxu1 %v2599_v49 }
0x1688   :  { %1557 = vmatprep.subr.bf16.mxu1 %v2606_v50 }
0x168b   :  { %1558 = vmatpush1.bf16.msra.mxu1 %v2613_v24 }
0x168c   :  { %1559 = vmatprep.subr.bf16.mxu1 %v2620_v25 }
0x168f   :  { %1560 = vmatpush1.bf16.msra.mxu1 %v2627_v52 }
0x16c0   :  { %v1037_v26 = vpop.f32.mrf.mxu1 }
0x16c1   :  { %v1038_v10 = vadd.f32 %v1037_v26, %v2566_v7 }
0x16c2   :  { %v1039_v31 = vpop.f32.mrf.mxu1 }
0x16c3   :  { %v1040_v14 = vadd.f32 %v1039_v31, %v2569_v8 }
0x16c4   :  { %v2749_v32 = vpop.f32.mrf.mxu1 }
0x16c6   :  { %v2751_v33 = vpop.f32.mrf.mxu1 }
0x16c8   :  { %v2753_v21 = vpop.f32.mrf.mxu1 }
0x16ca   :  { %v2755_v34 = vpop.f32.mrf.mxu1 }
0x1742   :  { %v1417_v35 = vpop.f32.mrf.mxu1 }
0x1743   :  { %v1424_v17 = vadd.f32 %v1417_v35, %v1032_v16 }
0x1744   :  { %v1419_v60 = vpop.f32.mrf.mxu1 }
0x1745   :  { %v1425_v0 = vadd.f32 %v1419_v60, %v1034_v53  ;;  %v1885_v55 = vmul.f32 -1.442695, %v1424_v17 }
0x1746   :  { %v1421_v28 = vpop.f32.mrf.mxu1 }
0x1747   :  { %v1427_v36 = vmul.f32 2.0, %v1425_v0 }
0x1748   :  { %v1422_v54 = vpop.f32.mrf.mxu1 }
0x1749   :  { %v1429_v56 = vsel %vm41_vm1, %v1427_v36, %v1425_v0 }
0x174a   :  { %v1886_v57 = vmul.f32 -1.442695, %v1429_v56  ;;  %v1046_v56 = vadd.f32 %v2751_v33, %v2569_v8 }
0x174c   :  { %2052 = vpow2.f32 %v1886_v57 }
0x174d   :  { %2054 = vpow2.f32 %v1885_v55  ;;  %v1044_v55 = vadd.f32 %v2749_v32, %v2566_v7 }
0x1759   :  { %v2053_v58 = vpop.eup %2052 }
0x175a   :  { %v2055_v41 = vpop.eup %2054  ;;  %v1437_v42 = vadd.f32 1.0, %v2053_v58 }
0x175b   :  { %v1436_v61 = vadd.f32 1.0, %v2055_v41 }
0x175c   :  { %2056 = vrcp.f32 %v1437_v42 }
0x175d   :  { %2058 = vrcp.f32 %v1436_v61 }
0x1769   :  { %v2057_v37 = vpop.eup %2056 }
0x176a   :  { %v1443_v43 = vmul.f32 2.0, %v2057_v37  ;;  %v2059_v45 = vpop.eup %2058 }
0x176b   :  { %v1448_v63 = vmul.f32 %v2059_v45, %v2723_v6 }
0x176c   :  { %v1888_v44 = vadd.f32 -1.0, %v1443_v43 }
0x176e   :  { %v1447_v46 = vsel %vm41_vm1, %v1888_v44, %v2057_v37 }
0x176f   :  { %v1449_v62 = vmul.f32 %v2059_v45, %v1447_v46 }
0x1771   :  { %1451 = vrot.lane.b32.xlu1 %v1449_v62, %s2093_s2 }
0x17e3   :  { %v1452_v22 = vpop.permute.xlu1 %1451 }
0x17e4   :  { %v1454_v23 = vadd.f32 %v1452_v22, %v1448_v63 }
0x17e6   :  { %2060 = vtanh.f32 %v1454_v23 }
0x17f3   :  { %v2061_v1 = vpop.eup %2060 }
0x17f4   :  { %v2765_v4 = vmul.f32 %v2061_v1, %v1447_v46 }
0x17f6   :  { %v1457_v5 = vpack.c.bf16 %v2765_v4, %v2765_v4 }
0x17f8   :  { %1459 = vrot.lane.b32.xlu0 %v1457_v5, %s2093_s2 }
0x186a   :  { %v1460_v59 = vpop.permute.xlu0 %1459 }
0x186b   :  { %1889 = vmatmul.mubr.msk.bf16.vlgmr.msra.gmra.mxu0 %vm293_vm2, %v1460_v59 }
0x186c   :  { %1635 = vmatpush1.bf16.msra.mxu0 %v2586_v47  ;;  %1658 = vmatprep.mubr.bf16.mxu0 %v2094_v39 }
0x186d   :  { %1636 = vmatprep.subr.bf16.mxu0 %v2592_v48 }
0x1870   :  { %1637 = vmatpush1.bf16.msra.mxu0 %v2599_v49 }
0x1871   :  { %1638 = vmatprep.subr.bf16.mxu0 %v2606_v50 }
0x1874   :  { %1639 = vmatpush1.bf16.msra.mxu0 %v2613_v24 }
0x1875   :  { %1640 = vmatprep.subr.bf16.mxu0 %v2620_v25 }
0x1878   :  { %1641 = vmatpush1.bf16.msra.mxu0 %v2627_v52 }
0x192b   :  { %v1498_v6 = vpop.f32.mrf.mxu0 }
0x192c   :  { %v1505_v15 = vadd.f32 %v1498_v6, %v1038_v10 }
0x192d   :  { %v1500_v47 = vpop.f32.mrf.mxu0 }
0x192e   :  { %v1506_v39 = vadd.f32 %v1500_v47, %v1040_v14  ;;  %v1890_v49 = vmul.f32 -1.442695, %v1505_v15 }
0x192f   :  { %v1502_v19 = vpop.f32.mrf.mxu0 }
0x1930   :  { %v1508_v48 = vmul.f32 2.0, %v1506_v39 }
0x1931   :  { %v1503_v2 = vpop.f32.mrf.mxu0 }
0x1932   :  { %v1510_v50 = vsel %vm41_vm1, %v1508_v48, %v1506_v39  ;;  %v1700_v39 = vld [vmem:[%s2857_s7] sm:$0xff]  ;;  %v1723_v2 = vsub.s32 2, %v2175_v11 }
0x1933   :  { %v1891_v24 = vmul.f32 -1.442695, %v1510_v50  ;;  %v1704_v48 = vrot.slane %v1700_v39, %v2178_v12  ;;  %v1743_v50 = vsub.s32 4, %v2175_v11 }
0x1935   :  { %2062 = vpow2.f32 %v1891_v24  ;;  %v1744_v24 = vrot.slane %v1700_v39, %v1743_v50 }
0x1936   :  { %2064 = vpow2.f32 %v1890_v49  ;;  %v1724_v49 = vrot.slane %v1700_v39, %v1723_v2 }
0x1942   :  { %v2063_v25 = vpop.eup %2062 }
0x1943   :  { %v2065_v52 = vpop.eup %2064  ;;  %v1518_v29 = vadd.f32 1.0, %v2063_v25  ;;  %v1763_v25 = vsub.s32 6, %v2175_v11 }
0x1944   :  { %v1517_v9 = vadd.f32 1.0, %v2065_v52 }
0x1945   :  { %2066 = vrcp.f32 %v1518_v29  ;;  %v1764_v52 = vrot.slane %v1700_v39, %v1763_v25 }
0x1946   :  { %2068 = vrcp.f32 %v1517_v9  ;;  %v1050_v9 = vadd.f32 %v2753_v21, %v2566_v7 }
0x1952   :  { %v2067_v38 = vpop.eup %2066 }
0x1953   :  { %v1524_v3 = vmul.f32 2.0, %v2067_v38  ;;  %v2069_v26 = vpop.eup %2068 }
0x1954   :  { %v1529_v16 = vmul.f32 %v2069_v26, %v1454_v23 }
0x1955   :  { %v1893_v51 = vadd.f32 -1.0, %v1524_v3 }
0x1957   :  { %v1528_v31 = vsel %vm41_vm1, %v1893_v51, %v2067_v38  ;;  %v1052_v38 = vadd.f32 %v2755_v34, %v2569_v8 }
0x1958   :  { %v1530_v35 = vmul.f32 %v2069_v26, %v1528_v31 }
0x195a   :  { %1532 = vrot.lane.b32.xlu1 %v1530_v35, %s2093_s2 }
0x19cc   :  { %v1533_v53 = vpop.permute.xlu1 %1532 }
0x19cd   :  { %v1535_v60 = vadd.f32 %v1533_v53, %v1529_v16 }
0x19cf   :  { %2070 = vtanh.f32 %v1535_v60 }
0x19dc   :  { %v2071_v17 = vpop.eup %2070 }
0x19dd   :  { %v2786_v0 = vmul.f32 %v2071_v17, %v1528_v31 }
0x19df   :  { %v1538_v28 = vpack.c.bf16 %v2786_v0, %v2786_v0 }
0x19e1   :  { %1540 = vrot.lane.b32.xlu0 %v1538_v28, %s2093_s2 }
0x1a53   :  { %v1541_v36 = vpop.permute.xlu0 %1540 }
0x1a54   :  { %1894 = vmatmul.mubr.msk.bf16.vlgmr.msra.gmra.mxu1 %vm293_vm2, %v1541_v36 }
0x1b14   :  { %v1579_v54 = vpop.f32.mrf.mxu1 }
0x1b15   :  { %v1586_v58 = vadd.f32 %v1579_v54, %v1044_v55 }
0x1b16   :  { %v1581_v57 = vpop.f32.mrf.mxu1 }
0x1b17   :  { %v1587_v41 = vadd.f32 %v1581_v57, %v1046_v56  ;;  %v1895_v43 = vmul.f32 -1.442695, %v1586_v58  ;;  %v1714_v58 = vrot.slane %v1700_v39, %v2181_v13 }
0x1b18   :  { %v1583_v42 = vpop.f32.mrf.mxu1 }
0x1b19   :  { %v1589_v61 = vmul.f32 2.0, %v1587_v41 }
0x1b1a   :  { %v1584_v37 = vpop.f32.mrf.mxu1 }
0x1b1b   :  { %v1591_v44 = vsel %vm41_vm1, %v1589_v61, %v1587_v41  ;;  %v1733_v41 = vsub.s32 3, %v2175_v11  ;;  %v1753_v61 = vsub.s32 5, %v2175_v11 }
0x1b1c   :  { %v1896_v45 = vmul.f32 -1.442695, %v1591_v44 }
0x1b1d   :  { %v1734_v42 = vrot.slane %v1700_v39, %v1733_v41  ;;  %v1754_v37 = vrot.slane %v1700_v39, %v1753_v61 }
0x1b1e   :  { %2072 = vpow2.f32 %v1896_v45 }
0x1b1f   :  { %2074 = vpow2.f32 %v1895_v43  ;;  %v1773_v43 = vsub.s32 7, %v2175_v11 }
0x1b21   :  { %v1774_v18 = vrot.slane %v1700_v39, %v1773_v43 }
0x1b2b   :  { %v2073_v46 = vpop.eup %2072 }
0x1b2c   :  { %v2075_v62 = vpop.eup %2074  ;;  %v1599_v63 = vadd.f32 1.0, %v2073_v46 }
0x1b2d   :  { %v1598_v32 = vadd.f32 1.0, %v2075_v62 }
0x1b2e   :  { %2076 = vrcp.f32 %v1599_v63 }
0x1b2f   :  { %2078 = vrcp.f32 %v1598_v32 }
0x1b3b   :  { %v2077_v33 = vpop.eup %2076 }
0x1b3c   :  { %v1605_v22 = vmul.f32 2.0, %v2077_v33  ;;  %v2079_v1 = vpop.eup %2078 }
0x1b3d   :  { %v1610_v6 = vmul.f32 %v2079_v1, %v1535_v60 }
0x1b3e   :  { %v1898_v23 = vadd.f32 -1.0, %v1605_v22 }
0x1b40   :  { %v1609_v5 = vsel %vm41_vm1, %v1898_v23, %v2077_v33 }
0x1b41   :  { %v1611_v59 = vmul.f32 %v2079_v1, %v1609_v5 }
0x1b43   :  { %1613 = vrot.lane.b32.xlu1 %v1611_v59, %s2093_s2 }
0x1bb5   :  { %v1614_v10 = vpop.permute.xlu1 %1613 }
0x1bb6   :  { %v1616_v14 = vadd.f32 %v1614_v10, %v1610_v6 }
0x1bb8   :  { %2080 = vtanh.f32 %v1616_v14 }
0x1bc5   :  { %v2081_v47 = vpop.eup %2080 }
0x1bc6   :  { %v2801_v15 = vmul.f32 %v2081_v47, %v1609_v5  ;;  %v14_v47 = vstv %s2858_s8 }
0x1bc7   :  { %15 = vst [vmem:[#allocation2] sm:$0x1] %v14_v47 }
0x1bc8   :  { %v1619_v19 = vpack.c.bf16 %v2801_v15, %v2801_v15 }
0x1bca   :  { %1621 = vrot.lane.b32.xlu0 %v1619_v19, %s2093_s2 }
0x1bce   :  { %1706 = vrot.lane.b32.xlu0 %v1704_v48, %s2093_s2 }
0x1bd2   :  { %1726 = vrot.lane.b32.xlu0 %v1724_v49, %s2093_s2 }
0x1bd6   :  { %1746 = vrot.lane.b32.xlu0 %v1744_v24, %s2093_s2 }
0x1bda   :  { %1766 = vrot.lane.b32.xlu0 %v1764_v52, %s2093_s2  ;;  %v1904_v52 = vld [vmem:[#allocation2] ss:$0 sm:$0xff] }
0x1c3c   :  { %v1622_v29 = vpop.permute.xlu0 %1621 }
0x1c3d   :  { %1899 = vmatmul.mubr.msk.bf16.vlgmr.msra.gmra.mxu0 %vm293_vm2, %v1622_v29 }
0x1c40   :  { %v1707_v44 = vpop.permute.xlu0 %1706 }
0x1c41   :  { %v1709_v32 = vmul.f32 %v1707_v44, %v2636_v40 }
0x1c44   :  { %v1727_v62 = vpop.permute.xlu0 %1726 }
0x1c45   :  { %v1729_v22 = vmul.f32 %v1727_v62, %v2690_v20 }
0x1c48   :  { %v1747_v11 = vpop.permute.xlu0 %1746 }
0x1c49   :  { %v1749_v6 = vmul.f32 %v1747_v11, %v2765_v4 }
0x1cfd   :  { %v1660_v12 = vpop.f32.mrf.mxu0 }
0x1cfe   :  { %v1667_v51 = vadd.f32 %v1660_v12, %v1050_v9 }
0x1cff   :  { %v1662_v3 = vpop.f32.mrf.mxu0 }
0x1d00   :  { %v1668_v26 = vadd.f32 %v1662_v3, %v1052_v38  ;;  %v1900_v53 = vmul.f32 -1.442695, %v1667_v51 }
0x1d01   :  { %v1664_v31 = vpop.f32.mrf.mxu0 }
0x1d02   :  { %v1670_v35 = vmul.f32 2.0, %v1668_v26 }
0x1d03   :  { %v1665_v16 = vpop.f32.mrf.mxu0 }
0x1d04   :  { %v1672_v60 = vsel %vm41_vm1, %v1670_v35, %v1668_v26 }
0x1d05   :  { %v1901_v17 = vmul.f32 -1.442695, %v1672_v60 }
0x1d07   :  { %2082 = vpow2.f32 %v1901_v17 }
0x1d08   :  { %2084 = vpow2.f32 %v1900_v53 }
0x1d14   :  { %v2083_v28 = vpop.eup %2082 }
0x1d15   :  { %v2085_v36 = vpop.eup %2084  ;;  %v1680_v54 = vadd.f32 1.0, %v2083_v28 }
0x1d16   :  { %v1679_v7 = vadd.f32 1.0, %v2085_v36 }
0x1d17   :  { %2086 = vrcp.f32 %v1680_v54 }
0x1d18   :  { %2088 = vrcp.f32 %v1679_v7 }
0x1d24   :  { %v2087_v8 = vpop.eup %2086 }
0x1d25   :  { %v1686_v21 = vmul.f32 2.0, %v2087_v8  ;;  %v2089_v55 = vpop.eup %2088 }
0x1d26   :  { %v1691_v45 = vmul.f32 %v2089_v55, %v1616_v14 }
0x1d27   :  { %v1903_v34 = vadd.f32 -1.0, %v1686_v21 }
0x1d29   :  { %v1690_v56 = vsel %vm41_vm1, %v1903_v34, %v2087_v8 }
0x1d2a   :  { %v1692_v57 = vmul.f32 %v2089_v55, %v1690_v56 }
0x1d2c   :  { %1694 = vrot.lane.b32.xlu1 %v1692_v57, %s2093_s2 }
0x1d30   :  { %1716 = vrot.lane.b32.xlu1 %v1714_v58, %s2093_s2 }
0x1d34   :  { %1736 = vrot.lane.b32.xlu1 %v1734_v42, %s2093_s2 }
0x1d38   :  { %1756 = vrot.lane.b32.xlu1 %v1754_v37, %s2093_s2 }
0x1d3c   :  { %1776 = vrot.lane.b32.xlu1 %v1774_v18, %s2093_s2 }
0x1d9e   :  { %v1695_v13 = vpop.permute.xlu1 %1694 }
0x1d9f   :  { %v1697_v46 = vadd.f32 %v1695_v13, %v1691_v45 }
0x1da1   :  { %2090 = vtanh.f32 %v1697_v46 }
0x1da2   :  { %v1717_v63 = vpop.permute.xlu1 %1716 }
0x1da3   :  { %v1719_v33 = vmul.f32 %v1717_v63, %v2663_v27  ;;  %v1767_v27 = vpop.permute.xlu0 %1766 }
0x1da4   :  { %v1769_v2 = vmul.f32 %v1767_v27, %v2801_v15 }
0x1da5   :  { %v1720_v23 = vadd.f32 %v1719_v33, %v1709_v32 }
0x1da6   :  { %v1737_v1 = vpop.permute.xlu1 %1736 }
0x1da7   :  { %v1730_v5 = vadd.f32 %v1729_v22, %v1720_v23  ;;  %v1739_v59 = vmul.f32 %v1737_v1, %v2735_v30 }
0x1da9   :  { %v1740_v10 = vadd.f32 %v1739_v59, %v1730_v5 }
0x1daa   :  { %v1757_v14 = vpop.permute.xlu1 %1756 }
0x1dab   :  { %v1750_v39 = vadd.f32 %v1749_v6, %v1740_v10  ;;  %v1759_v40 = vmul.f32 %v1757_v14, %v2786_v0 }
0x1dad   :  { %v1760_v20 = vadd.f32 %v1759_v40, %v1750_v39 }
0x1dae   :  { %v2091_v19 = vpop.eup %2090  ;;  %v1777_v48 = vpop.permute.xlu1 %1776 }
0x1daf   :  { %v1699_v49 = vmul.f32 %v2091_v19, %v1690_v56  ;;  %v1770_v30 = vadd.f32 %v1769_v2, %v1760_v20 }
0x1db1   :  { %v1779_v50 = vmul.f32 %v1777_v48, %v1699_v49 }
0x1db3   :  { %v1780_v4 = vadd.f32 %v1779_v50, %v1770_v30 }
0x1db5   :  { %1782 = vrot.lane.b32.xlu0 %v1780_v4, %s2093_s2 }
0x1e27   :  { %v1783_v24 = vpop.permute.xlu0 %1782 }
0x1e28   :  { %v1785_v25 = vsel %vm293_vm2, %v1783_v24, 0.0 }
0x1e29   :  { %1786 = vadd.xlane.f32.xlu1 %v1785_v25 }
0x1eb2   :  { %v1787_v0 = vpop.xlane.xlu1 %1786 }
0x1eb3   :  { %v1795_v29 = vadd.f32 %v1904_v52, %v1787_v0 }
0x1eb5   :  { %1797 = vst.msk [vmem:[%s2859_s9] sm:$0xff] %vm1796_vm3, %v1795_v29 }

</bundles_post_ra>
